<compile_context>
chip_gen: v6e
topology: v6e:2x2x1
jax: 0.10.0
libtpu: 0.0.40
codegen_flags: <defaults>
</compile_context>

<pallas_src>
from functools import lru_cache

import numpy as np
import jax
import jax.numpy as jnp
from jax.experimental import pallas as pl
from jax.experimental.pallas import tpu as pltpu


# ----------------------------------------------------------------------------
# Host-side interpolation constants (align_corners=False), cached.
# ----------------------------------------------------------------------------
def _interp_matrix(out_size: int, in_size: int) -> np.ndarray:
    """1-D interpolation matrix matching F.interpolate(bilinear, align_corners=False)."""
    o = np.arange(out_size, dtype=np.float64)
    src = (o + 0.5) * (in_size / out_size) - 0.5
    src = np.maximum(src, 0.0)
    i0 = np.floor(src).astype(np.int64)
    lam = src - i0
    i0c = np.clip(i0, 0, in_size - 1)
    i1c = np.clip(i0 + 1, 0, in_size - 1)
    m = np.zeros((out_size, in_size), dtype=np.float64)
    m[np.arange(out_size), i0c] += 1.0 - lam
    m[np.arange(out_size), i1c] += lam
    return m


def _interp_taps(out_size: int, in_size: int):
    """Static 2-tap (index, weight) pairs for one interpolation axis."""
    i0, i1, w0, w1 = [], [], [], []
    for o in range(out_size):
        src = max((o + 0.5) * (in_size / out_size) - 0.5, 0.0)
        f = int(np.floor(src))
        lam = src - f
        i0.append(min(f, in_size - 1))
        i1.append(min(f + 1, in_size - 1))
        w0.append(1.0 - lam)
        w1.append(lam)
    return tuple(i0), tuple(i1), tuple(w0), tuple(w1)


@lru_cache(maxsize=None)
def _resize_constants(oh: int, ow: int, h_in: int, w_in: int):
    rwt = _interp_matrix(ow, w_in).T.astype(np.float32)   # (W, OW), width interp
    hi0, hi1, hw0, hw1 = _interp_taps(oh, h_in)            # static height taps
    return rwt, hi0, hi1, hw0, hw1


# ----------------------------------------------------------------------------
# Pallas kernel (closure over the static shape / interpolation constants).
# ----------------------------------------------------------------------------
def _make_aux_kernel(h_in, w_in, oh, ow, hi0, hi1, hw0, hw1):
    def kernel(p_ref, w1_ref, b1_ref, w2_ref, b2_ref, rwt_ref, out_ref):
        # p_ref:   (1, 9*Cin, H*W)  im2col patches, channels-first, lane = H*W
        # w1_ref:  (C1, 9*Cin)      3x3 conv weights with BN scale folded in
        # b1_ref:  (C1, 1)          folded BN bias
        # w2_ref:  (NC, C1)         1x1 conv weights
        # b2_ref:  (NC, 1)          1x1 conv bias
        # rwt_ref: (W, OW)          width bilinear matrix (always f32)
        # out_ref: (1, NC, OH*OW)   lane-dense channels-first output
        patches = p_ref[0]                                        # (9*Cin, H*W)

        # conv3x3 (pad=1, no bias) + folded BN scale: ONE matmul on the MXU.
        feat = jnp.dot(w1_ref[...], patches,
                       preferred_element_type=jnp.float32)        # (C1, H*W)
        feat = jnp.maximum(feat + b1_ref[...], 0.0)               # + BN bias, ReLU

        # Dropout2d(p=0.1): identity at inference.
        # TODO(synk): training-mode channel dropout (PyTorch RNG) not reproduced.

        # 1x1 conv with bias, channels-first (K = C1, lane-dense output).
        logits = jnp.dot(w2_ref[...], feat.astype(w2_ref.dtype),
                         preferred_element_type=jnp.float32) + b2_ref[...]  # (NC, H*W)

        # Separable bilinear upsample (align_corners=False):
        #   width:  per input row y, (NC, W) @ (W, OW) on the MXU,
        #   height: each output row is a static 2-tap weighted blend (VPU).
        rwt = rwt_ref[...]                                        # (W, OW) f32
        lw = [
            jnp.dot(logits[:, y * w_in:(y + 1) * w_in].astype(rwt.dtype), rwt,
                    preferred_element_type=jnp.float32)           # (NC, OW)
            for y in range(h_in)
        ]
        for oy in range(oh):
            i0, i1, a0, a1 = hi0[oy], hi1[oy], hw0[oy], hw1[oy]
            if i0 == i1 or a1 == 0.0:
                row = lw[i0]                    # taps collapse; weights sum to 1
            else:
                row = a0 * lw[i0] + a1 * lw[i1]                   # (NC, OW)
            out_ref[0, :, oy * ow:(oy + 1) * ow] = row.astype(out_ref.dtype)

    return kernel


# ----------------------------------------------------------------------------
# Wrapper: PyTorch-convention NCHW in, NCHW out.
# ----------------------------------------------------------------------------
def auxiliary_branch_forward(x_nchw, params, img_size, *, compute_dtype=jnp.float32):
    """Pallas implementation of auxiliary_branch.forward(x, img_size) (eval mode).

    compute_dtype: dtype of the matmul operands (jnp.float32 or jnp.bfloat16).
    Accumulation is always f32; the interpolation matrix stays f32.
    """
    n, cin, h_in, w_in = x_nchw.shape
    oh, ow = img_size
    w1 = params["w1"]                      # (C1, Cin, 3, 3)
    c1 = w1.shape[0]
    nc = params["w2"].shape[0]
    eps = 1e-5

    # Fold BatchNorm (eval) into the conv3x3 weights and a single bias.
    scale = params["gamma"] / jnp.sqrt(params["var"] + eps)               # (C1,)
    w1f = (jnp.transpose(w1, (0, 2, 3, 1)).reshape(c1, 9 * cin)
           * scale[:, None]).astype(compute_dtype)                        # (C1, 9*Cin)
    b1 = (params["beta"] - params["mean"] * scale).reshape(c1, 1).astype(jnp.float32)
    w2f = params["w2"].reshape(nc, c1).astype(compute_dtype)              # (NC, C1)
    b2 = params["b2"].reshape(nc, 1).astype(jnp.float32)                  # (NC, 1)

    # Interpolation constants (cached host-side work).
    rwt_np, hi0, hi1, hw0, hw1 = _resize_constants(oh, ow, h_in, w_in)
    rwt = jnp.asarray(rwt_np, jnp.float32)                                # (W, OW)

    # im2col, channels-first: (N, 9*Cin, H*W) with H*W on the lane axis.
    xp = jnp.pad(x_nchw.astype(jnp.float32), ((0, 0), (0, 0), (1, 1), (1, 1)))
    taps = [xp[:, :, dy:dy + h_in, dx:dx + w_in].reshape(n, cin, h_in * w_in)
            for dy in range(3) for dx in range(3)]
    patches = (jnp.stack(taps, axis=1)
               .reshape(n, 9 * cin, h_in * w_in).astype(compute_dtype))

    kernel = _make_aux_kernel(h_in, w_in, oh, ow, hi0, hi1, hw0, hw1)

    # Advisory cost estimate for the XLA scheduler.
    flops = n * (2 * c1 * 9 * cin * h_in * w_in       # conv3x3 matmul
                 + 2 * nc * c1 * h_in * w_in          # 1x1 conv matmul
                 + 2 * nc * h_in * w_in * ow          # width upsample matmuls
                 + 3 * nc * oh * ow)                  # height 2-tap blends
    item = int(np.dtype(compute_dtype).itemsize)
    bytes_accessed = (n * 9 * cin * h_in * w_in * item
                      + c1 * 9 * cin * item + nc * c1 * item
                      + (c1 + nc) * 4 + w_in * ow * 4
                      + n * nc * oh * ow * 4)

    out_flat = pl.pallas_call(
        kernel,
        out_shape=jax.ShapeDtypeStruct((n, nc, oh * ow), jnp.float32),
        grid_spec=pltpu.PrefetchScalarGridSpec(
            num_scalar_prefetch=0,
            grid=(n,),
            in_specs=[
                pl.BlockSpec((1, 9 * cin, h_in * w_in), lambda b: (b, 0, 0)),
                pl.BlockSpec((c1, 9 * cin), lambda b: (0, 0)),
                pl.BlockSpec((c1, 1), lambda b: (0, 0)),
                pl.BlockSpec((nc, c1), lambda b: (0, 0)),
                pl.BlockSpec((nc, 1), lambda b: (0, 0)),
                pl.BlockSpec((w_in, ow), lambda b: (0, 0)),
            ],
            out_specs=pl.BlockSpec((1, nc, oh * ow), lambda b: (b, 0, 0)),
        ),
        compiler_params=pltpu.CompilerParams(
            dimension_semantics=("parallel",)),
        cost_estimate=pl.CostEstimate(flops=int(flops), transcendentals=0,
                                      bytes_accessed=int(bytes_accessed)),
    )(patches, w1f, b1, w2f, b2, rwt)

    # Already channels-first; a contiguous reshape replaces any transpose.
    return out_flat.reshape(n, nc, oh, ow)


# ----------------------------------------------------------------------------
# Pure-JAX reference of the same forward pass (eval mode).
# ----------------------------------------------------------------------------
def _reference(x_nchw, params, img_size):
    eps = 1e-5
    y = jax.lax.conv_general_dilated(
        x_nchw, params["w1"], window_strides=(1, 1), padding="SAME",
        dimension_numbers=("NCHW", "OIHW", "NCHW"))
    scale = params["gamma"] / jnp.sqrt(params["var"] + eps)
    bias = params["beta"] - params["mean"] * scale
    y = jnp.maximum(y * scale[None, :, None, None] + bias[None, :, None, None], 0.0)
    z = jax.lax.conv_general_dilated(
        y, params["w2"], window_strides=(1, 1), padding="VALID",
        dimension_numbers=("NCHW", "OIHW", "NCHW"))
    z = z + params["b2"][None, :, None, None]
    oh, ow = img_size
    mh = jnp.asarray(_interp_matrix(oh, z.shape[2]), jnp.float32)
    mw = jnp.asarray(_interp_matrix(ow, z.shape[3]), jnp.float32)
    return jnp.einsum("Oh,Pw,nchw->ncOP", mh, mw, z)


if __name__ == "__main__":
    key = jax.random.PRNGKey(0)
    n, cin, h, w = 2, 4, 16, 16           # batch=2, in_channels=4, 16x16 feature map
    c1 = 256                               # fixed by the module (Conv2d(..., 256, 3))
    nc = 5                                 # num_classes
    img_size = (32, 32)

    ks = jax.random.split(key, 8)
    x = jax.random.normal(ks[0], (n, cin, h, w), jnp.float32)
    params = dict(
        w1=jax.random.normal(ks[1], (c1, cin, 3, 3), jnp.float32) * 0.1,
        gamma=jax.random.uniform(ks[2], (c1,), jnp.float32, minval=0.5, maxval=1.5),
        beta=jax.random.normal(ks[3], (c1,), jnp.float32) * 0.1,
        mean=jax.random.normal(ks[4], (c1,), jnp.float32) * 0.1,
        var=jax.random.uniform(ks[5], (c1,), jnp.float32, minval=0.5, maxval=1.5),
        w2=jax.random.normal(ks[6], (nc, c1, 1, 1), jnp.float32) * 0.1,
        b2=jax.random.normal(ks[7], (nc,), jnp.float32) * 0.1,
    )

    ref = _reference(x, params, img_size)

    fwd = jax.jit(auxiliary_branch_forward,
                  static_argnames=("img_size", "compute_dtype"))

    # Default f32 path: matches the reference tightly.
    out = jax.block_until_ready(fwd(x, params, img_size=img_size))
    assert out.shape == (n, nc) + img_size
    np.testing.assert_allclose(np.asarray(out), np.asarray(ref), rtol=1e-4, atol=1e-4)

    # v6e/v7x fast path: bf16 matmul operands (f32 accumulation, f32 interp).
    out_bf16 = jax.block_until_ready(
        fwd(x, params, img_size=img_size, compute_dtype=jnp.bfloat16))
    np.testing.assert_allclose(np.asarray(out_bf16), np.asarray(ref),
                               rtol=1e-1, atol=1e-1)   # bf16 ~8-bit mantissa inputs

    print("KERNEL_OK")
</pallas_src>

<mosaic_0001>
module attributes {stable_mosaic.version = 11 : i64} {
  func.func @kernel(%arg0: i32, %arg1: memref<1x36x256xf32, #tpu.memory_space<vmem>>, %arg2: memref<256x36xf32, #tpu.memory_space<vmem>>, %arg3: memref<256x1xf32, #tpu.memory_space<vmem>>, %arg4: memref<5x256xf32, #tpu.memory_space<vmem>>, %arg5: memref<5x1xf32, #tpu.memory_space<vmem>>, %arg6: memref<16x32xf32, #tpu.memory_space<vmem>>, %arg7: memref<1x5x1024xf32, #tpu.memory_space<vmem>>) attributes {dimension_semantics = [#tpu.dimension_semantics<parallel>], iteration_bounds = array<i64: 2>, scalar_prefetch = 0 : i64, scratch_operands = 0 : i64, tpu.core_type = #tpu.core_type<tc>, window_params = [{transform_indices = @transform_0, window_bounds = array<i64: 1, 36, 256>}, {pipeline_mode = #tpu.pipeline_mode<synchronous>, transform_indices = @transform_1, window_bounds = array<i64: 256, 36>}, {pipeline_mode = #tpu.pipeline_mode<synchronous>, transform_indices = @transform_2, window_bounds = array<i64: 256, 1>}, {pipeline_mode = #tpu.pipeline_mode<synchronous>, transform_indices = @transform_3, window_bounds = array<i64: 5, 256>}, {pipeline_mode = #tpu.pipeline_mode<synchronous>, transform_indices = @transform_4, window_bounds = array<i64: 5, 1>}, {pipeline_mode = #tpu.pipeline_mode<synchronous>, transform_indices = @transform_5, window_bounds = array<i64: 16, 32>}, {transform_indices = @transform_6, window_bounds = array<i64: 1, 5, 1024>}]} {
    %c0 = arith.constant 0 : index
    %c0_0 = arith.constant 0 : index
    %c0_1 = arith.constant 0 : index
    %0 = vector.load %arg1[%c0, %c0_0, %c0_1] : memref<1x36x256xf32, #tpu.memory_space<vmem>>, vector<1x36x256xf32>
    %1 = vector.shape_cast %0 : vector<1x36x256xf32> to vector<36x256xf32>
    %c0_2 = arith.constant 0 : index
    %c0_3 = arith.constant 0 : index
    %2 = vector.load %arg2[%c0_2, %c0_3] : memref<256x36xf32, #tpu.memory_space<vmem>>, vector<256x36xf32>
    %cst = arith.constant dense<0.000000e+00> : vector<256x256xf32>
    %3 = tpu.matmul %2, %1, %cst {dimension_numbers = #tpu.dot_dimension_numbers<[1], [0], [0], [1], [0, 0, 1, 1], [], []>} : vector<256x36xf32>, vector<36x256xf32>, vector<256x256xf32> -> vector<256x256xf32>
    %c0_4 = arith.constant 0 : index
    %c0_5 = arith.constant 0 : index
    %4 = vector.load %arg3[%c0_4, %c0_5] : memref<256x1xf32, #tpu.memory_space<vmem>>, vector<256x1xf32>
    %5 = vector.broadcast %4 : vector<256x1xf32> to vector<256x256xf32>
    %6 = arith.addf %3, %5 : vector<256x256xf32>
    %cst_6 = arith.constant 0.000000e+00 : f32
    %7 = vector.broadcast %cst_6 : f32 to vector<256x256xf32>
    %8 = arith.maximumf %6, %7 : vector<256x256xf32>
    %c0_7 = arith.constant 0 : index
    %c0_8 = arith.constant 0 : index
    %9 = vector.load %arg4[%c0_7, %c0_8] : memref<5x256xf32, #tpu.memory_space<vmem>>, vector<5x256xf32>
    %cst_9 = arith.constant dense<0.000000e+00> : vector<5x256xf32>
    %10 = tpu.matmul %9, %8, %cst_9 {dimension_numbers = #tpu.dot_dimension_numbers<[1], [0], [0], [1], [0, 0, 1, 1], [], []>} : vector<5x256xf32>, vector<256x256xf32>, vector<5x256xf32> -> vector<5x256xf32>
    %c0_10 = arith.constant 0 : index
    %c0_11 = arith.constant 0 : index
    %11 = vector.load %arg5[%c0_10, %c0_11] : memref<5x1xf32, #tpu.memory_space<vmem>>, vector<5x1xf32>
    %12 = vector.broadcast %11 : vector<5x1xf32> to vector<5x256xf32>
    %13 = arith.addf %10, %12 : vector<5x256xf32>
    %c0_12 = arith.constant 0 : index
    %c0_13 = arith.constant 0 : index
    %14 = vector.load %arg6[%c0_12, %c0_13] : memref<16x32xf32, #tpu.memory_space<vmem>>, vector<16x32xf32>
    %15 = vector.extract_strided_slice %13 {offsets = [0, 0], sizes = [5, 16], strides = [1, 1]} : vector<5x256xf32> to vector<5x16xf32>
    %cst_14 = arith.constant dense<0.000000e+00> : vector<5x32xf32>
    %16 = tpu.matmul %15, %14, %cst_14 {dimension_numbers = #tpu.dot_dimension_numbers<[1], [0], [0], [1], [0, 0, 1, 1], [], []>} : vector<5x16xf32>, vector<16x32xf32>, vector<5x32xf32> -> vector<5x32xf32>
    %17 = vector.extract_strided_slice %13 {offsets = [0, 16], sizes = [5, 16], strides = [1, 1]} : vector<5x256xf32> to vector<5x16xf32>
    %cst_15 = arith.constant dense<0.000000e+00> : vector<5x32xf32>
    %18 = tpu.matmul %17, %14, %cst_15 {dimension_numbers = #tpu.dot_dimension_numbers<[1], [0], [0], [1], [0, 0, 1, 1], [], []>} : vector<5x16xf32>, vector<16x32xf32>, vector<5x32xf32> -> vector<5x32xf32>
    %19 = vector.extract_strided_slice %13 {offsets = [0, 32], sizes = [5, 16], strides = [1, 1]} : vector<5x256xf32> to vector<5x16xf32>
    %cst_16 = arith.constant dense<0.000000e+00> : vector<5x32xf32>
    %20 = tpu.matmul %19, %14, %cst_16 {dimension_numbers = #tpu.dot_dimension_numbers<[1], [0], [0], [1], [0, 0, 1, 1], [], []>} : vector<5x16xf32>, vector<16x32xf32>, vector<5x32xf32> -> vector<5x32xf32>
    %21 = vector.extract_strided_slice %13 {offsets = [0, 48], sizes = [5, 16], strides = [1, 1]} : vector<5x256xf32> to vector<5x16xf32>
    %cst_17 = arith.constant dense<0.000000e+00> : vector<5x32xf32>
    %22 = tpu.matmul %21, %14, %cst_17 {dimension_numbers = #tpu.dot_dimension_numbers<[1], [0], [0], [1], [0, 0, 1, 1], [], []>} : vector<5x16xf32>, vector<16x32xf32>, vector<5x32xf32> -> vector<5x32xf32>
    %23 = vector.extract_strided_slice %13 {offsets = [0, 64], sizes = [5, 16], strides = [1, 1]} : vector<5x256xf32> to vector<5x16xf32>
    %cst_18 = arith.constant dense<0.000000e+00> : vector<5x32xf32>
    %24 = tpu.matmul %23, %14, %cst_18 {dimension_numbers = #tpu.dot_dimension_numbers<[1], [0], [0], [1], [0, 0, 1, 1], [], []>} : vector<5x16xf32>, vector<16x32xf32>, vector<5x32xf32> -> vector<5x32xf32>
    %25 = vector.extract_strided_slice %13 {offsets = [0, 80], sizes = [5, 16], strides = [1, 1]} : vector<5x256xf32> to vector<5x16xf32>
    %cst_19 = arith.constant dense<0.000000e+00> : vector<5x32xf32>
    %26 = tpu.matmul %25, %14, %cst_19 {dimension_numbers = #tpu.dot_dimension_numbers<[1], [0], [0], [1], [0, 0, 1, 1], [], []>} : vector<5x16xf32>, vector<16x32xf32>, vector<5x32xf32> -> vector<5x32xf32>
    %27 = vector.extract_strided_slice %13 {offsets = [0, 96], sizes = [5, 16], strides = [1, 1]} : vector<5x256xf32> to vector<5x16xf32>
    %cst_20 = arith.constant dense<0.000000e+00> : vector<5x32xf32>
    %28 = tpu.matmul %27, %14, %cst_20 {dimension_numbers = #tpu.dot_dimension_numbers<[1], [0], [0], [1], [0, 0, 1, 1], [], []>} : vector<5x16xf32>, vector<16x32xf32>, vector<5x32xf32> -> vector<5x32xf32>
    %29 = vector.extract_strided_slice %13 {offsets = [0, 112], sizes = [5, 16], strides = [1, 1]} : vector<5x256xf32> to vector<5x16xf32>
    %cst_21 = arith.constant dense<0.000000e+00> : vector<5x32xf32>
    %30 = tpu.matmul %29, %14, %cst_21 {dimension_numbers = #tpu.dot_dimension_numbers<[1], [0], [0], [1], [0, 0, 1, 1], [], []>} : vector<5x16xf32>, vector<16x32xf32>, vector<5x32xf32> -> vector<5x32xf32>
    %31 = vector.extract_strided_slice %13 {offsets = [0, 128], sizes = [5, 16], strides = [1, 1]} : vector<5x256xf32> to vector<5x16xf32>
    %cst_22 = arith.constant dense<0.000000e+00> : vector<5x32xf32>
    %32 = tpu.matmul %31, %14, %cst_22 {dimension_numbers = #tpu.dot_dimension_numbers<[1], [0], [0], [1], [0, 0, 1, 1], [], []>} : vector<5x16xf32>, vector<16x32xf32>, vector<5x32xf32> -> vector<5x32xf32>
    %33 = vector.extract_strided_slice %13 {offsets = [0, 144], sizes = [5, 16], strides = [1, 1]} : vector<5x256xf32> to vector<5x16xf32>
    %cst_23 = arith.constant dense<0.000000e+00> : vector<5x32xf32>
    %34 = tpu.matmul %33, %14, %cst_23 {dimension_numbers = #tpu.dot_dimension_numbers<[1], [0], [0], [1], [0, 0, 1, 1], [], []>} : vector<5x16xf32>, vector<16x32xf32>, vector<5x32xf32> -> vector<5x32xf32>
    %35 = vector.extract_strided_slice %13 {offsets = [0, 160], sizes = [5, 16], strides = [1, 1]} : vector<5x256xf32> to vector<5x16xf32>
    %cst_24 = arith.constant dense<0.000000e+00> : vector<5x32xf32>
    %36 = tpu.matmul %35, %14, %cst_24 {dimension_numbers = #tpu.dot_dimension_numbers<[1], [0], [0], [1], [0, 0, 1, 1], [], []>} : vector<5x16xf32>, vector<16x32xf32>, vector<5x32xf32> -> vector<5x32xf32>
    %37 = vector.extract_strided_slice %13 {offsets = [0, 176], sizes = [5, 16], strides = [1, 1]} : vector<5x256xf32> to vector<5x16xf32>
    %cst_25 = arith.constant dense<0.000000e+00> : vector<5x32xf32>
    %38 = tpu.matmul %37, %14, %cst_25 {dimension_numbers = #tpu.dot_dimension_numbers<[1], [0], [0], [1], [0, 0, 1, 1], [], []>} : vector<5x16xf32>, vector<16x32xf32>, vector<5x32xf32> -> vector<5x32xf32>
    %39 = vector.extract_strided_slice %13 {offsets = [0, 192], sizes = [5, 16], strides = [1, 1]} : vector<5x256xf32> to vector<5x16xf32>
    %cst_26 = arith.constant dense<0.000000e+00> : vector<5x32xf32>
    %40 = tpu.matmul %39, %14, %cst_26 {dimension_numbers = #tpu.dot_dimension_numbers<[1], [0], [0], [1], [0, 0, 1, 1], [], []>} : vector<5x16xf32>, vector<16x32xf32>, vector<5x32xf32> -> vector<5x32xf32>
    %41 = vector.extract_strided_slice %13 {offsets = [0, 208], sizes = [5, 16], strides = [1, 1]} : vector<5x256xf32> to vector<5x16xf32>
    %cst_27 = arith.constant dense<0.000000e+00> : vector<5x32xf32>
    %42 = tpu.matmul %41, %14, %cst_27 {dimension_numbers = #tpu.dot_dimension_numbers<[1], [0], [0], [1], [0, 0, 1, 1], [], []>} : vector<5x16xf32>, vector<16x32xf32>, vector<5x32xf32> -> vector<5x32xf32>
    %43 = vector.extract_strided_slice %13 {offsets = [0, 224], sizes = [5, 16], strides = [1, 1]} : vector<5x256xf32> to vector<5x16xf32>
    %cst_28 = arith.constant dense<0.000000e+00> : vector<5x32xf32>
    %44 = tpu.matmul %43, %14, %cst_28 {dimension_numbers = #tpu.dot_dimension_numbers<[1], [0], [0], [1], [0, 0, 1, 1], [], []>} : vector<5x16xf32>, vector<16x32xf32>, vector<5x32xf32> -> vector<5x32xf32>
    %45 = vector.extract_strided_slice %13 {offsets = [0, 240], sizes = [5, 16], strides = [1, 1]} : vector<5x256xf32> to vector<5x16xf32>
    %cst_29 = arith.constant dense<0.000000e+00> : vector<5x32xf32>
    %46 = tpu.matmul %45, %14, %cst_29 {dimension_numbers = #tpu.dot_dimension_numbers<[1], [0], [0], [1], [0, 0, 1, 1], [], []>} : vector<5x16xf32>, vector<16x32xf32>, vector<5x32xf32> -> vector<5x32xf32>
    %c0_30 = arith.constant 0 : index
    %c0_31 = arith.constant 0 : index
    %c0_32 = arith.constant 0 : index
    %47 = vector.load %arg7[%c0_30, %c0_31, %c0_32] : memref<1x5x1024xf32, #tpu.memory_space<vmem>>, vector<1x5x32xf32>
    %48 = vector.shape_cast %47 : vector<1x5x32xf32> to vector<5x32xf32>
    %49 = vector.shape_cast %16 : vector<5x32xf32> to vector<1x5x32xf32>
    tpu.vector_store %arg7[%c0_30, %c0_31, %c0_32], %49 {strides = array<i32>} : memref<1x5x1024xf32, #tpu.memory_space<vmem>>, vector<1x5x32xf32>,
    %cst_33 = arith.constant 7.500000e-01 : f32
    %50 = vector.broadcast %cst_33 : f32 to vector<5x32xf32>
    %51 = arith.mulf %50, %16 : vector<5x32xf32>
    %cst_34 = arith.constant 2.500000e-01 : f32
    %52 = vector.broadcast %cst_34 : f32 to vector<5x32xf32>
    %53 = arith.mulf %52, %18 : vector<5x32xf32>
    %54 = arith.addf %51, %53 : vector<5x32xf32>
    %c0_35 = arith.constant 0 : index
    %c0_36 = arith.constant 0 : index
    %c32 = arith.constant 32 : index
    %55 = vector.load %arg7[%c0_35, %c0_36, %c32] : memref<1x5x1024xf32, #tpu.memory_space<vmem>>, vector<1x5x32xf32>
    %56 = vector.shape_cast %55 : vector<1x5x32xf32> to vector<5x32xf32>
    %57 = vector.shape_cast %54 : vector<5x32xf32> to vector<1x5x32xf32>
    tpu.vector_store %arg7[%c0_35, %c0_36, %c32], %57 {strides = array<i32>} : memref<1x5x1024xf32, #tpu.memory_space<vmem>>, vector<1x5x32xf32>,
    %cst_37 = arith.constant 2.500000e-01 : f32
    %58 = vector.broadcast %cst_37 : f32 to vector<5x32xf32>
    %59 = arith.mulf %58, %16 : vector<5x32xf32>
    %cst_38 = arith.constant 7.500000e-01 : f32
    %60 = vector.broadcast %cst_38 : f32 to vector<5x32xf32>
    %61 = arith.mulf %60, %18 : vector<5x32xf32>
    %62 = arith.addf %59, %61 : vector<5x32xf32>
    %c0_39 = arith.constant 0 : index
    %c0_40 = arith.constant 0 : index
    %c64 = arith.constant 64 : index
    %63 = vector.load %arg7[%c0_39, %c0_40, %c64] : memref<1x5x1024xf32, #tpu.memory_space<vmem>>, vector<1x5x32xf32>
    %64 = vector.shape_cast %63 : vector<1x5x32xf32> to vector<5x32xf32>
    %65 = vector.shape_cast %62 : vector<5x32xf32> to vector<1x5x32xf32>
    tpu.vector_store %arg7[%c0_39, %c0_40, %c64], %65 {strides = array<i32>} : memref<1x5x1024xf32, #tpu.memory_space<vmem>>, vector<1x5x32xf32>,
    %cst_41 = arith.constant 7.500000e-01 : f32
    %66 = vector.broadcast %cst_41 : f32 to vector<5x32xf32>
    %67 = arith.mulf %66, %18 : vector<5x32xf32>
    %cst_42 = arith.constant 2.500000e-01 : f32
    %68 = vector.broadcast %cst_42 : f32 to vector<5x32xf32>
    %69 = arith.mulf %68, %20 : vector<5x32xf32>
    %70 = arith.addf %67, %69 : vector<5x32xf32>
    %c0_43 = arith.constant 0 : index
    %c0_44 = arith.constant 0 : index
    %c96 = arith.constant 96 : index
    %71 = vector.load %arg7[%c0_43, %c0_44, %c96] : memref<1x5x1024xf32, #tpu.memory_space<vmem>>, vector<1x5x32xf32>
    %72 = vector.shape_cast %71 : vector<1x5x32xf32> to vector<5x32xf32>
    %73 = vector.shape_cast %70 : vector<5x32xf32> to vector<1x5x32xf32>
    tpu.vector_store %arg7[%c0_43, %c0_44, %c96], %73 {strides = array<i32>} : memref<1x5x1024xf32, #tpu.memory_space<vmem>>, vector<1x5x32xf32>,
    %cst_45 = arith.constant 2.500000e-01 : f32
    %74 = vector.broadcast %cst_45 : f32 to vector<5x32xf32>
    %75 = arith.mulf %74, %18 : vector<5x32xf32>
    %cst_46 = arith.constant 7.500000e-01 : f32
    %76 = vector.broadcast %cst_46 : f32 to vector<5x32xf32>
    %77 = arith.mulf %76, %20 : vector<5x32xf32>
    %78 = arith.addf %75, %77 : vector<5x32xf32>
    %c0_47 = arith.constant 0 : index
    %c0_48 = arith.constant 0 : index
    %c128 = arith.constant 128 : index
    %79 = vector.load %arg7[%c0_47, %c0_48, %c128] : memref<1x5x1024xf32, #tpu.memory_space<vmem>>, vector<1x5x32xf32>
    %80 = vector.shape_cast %79 : vector<1x5x32xf32> to vector<5x32xf32>
    %81 = vector.shape_cast %78 : vector<5x32xf32> to vector<1x5x32xf32>
    tpu.vector_store %arg7[%c0_47, %c0_48, %c128], %81 {strides = array<i32>} : memref<1x5x1024xf32, #tpu.memory_space<vmem>>, vector<1x5x32xf32>,
    %cst_49 = arith.constant 7.500000e-01 : f32
    %82 = vector.broadcast %cst_49 : f32 to vector<5x32xf32>
    %83 = arith.mulf %82, %20 : vector<5x32xf32>
    %cst_50 = arith.constant 2.500000e-01 : f32
    %84 = vector.broadcast %cst_50 : f32 to vector<5x32xf32>
    %85 = arith.mulf %84, %22 : vector<5x32xf32>
    %86 = arith.addf %83, %85 : vector<5x32xf32>
    %c0_51 = arith.constant 0 : index
    %c0_52 = arith.constant 0 : index
    %c160 = arith.constant 160 : index
    %87 = vector.load %arg7[%c0_51, %c0_52, %c160] : memref<1x5x1024xf32, #tpu.memory_space<vmem>>, vector<1x5x32xf32>
    %88 = vector.shape_cast %87 : vector<1x5x32xf32> to vector<5x32xf32>
    %89 = vector.shape_cast %86 : vector<5x32xf32> to vector<1x5x32xf32>
    tpu.vector_store %arg7[%c0_51, %c0_52, %c160], %89 {strides = array<i32>} : memref<1x5x1024xf32, #tpu.memory_space<vmem>>, vector<1x5x32xf32>,
    %cst_53 = arith.constant 2.500000e-01 : f32
    %90 = vector.broadcast %cst_53 : f32 to vector<5x32xf32>
    %91 = arith.mulf %90, %20 : vector<5x32xf32>
    %cst_54 = arith.constant 7.500000e-01 : f32
    %92 = vector.broadcast %cst_54 : f32 to vector<5x32xf32>
    %93 = arith.mulf %92, %22 : vector<5x32xf32>
    %94 = arith.addf %91, %93 : vector<5x32xf32>
    %c0_55 = arith.constant 0 : index
    %c0_56 = arith.constant 0 : index
    %c192 = arith.constant 192 : index
    %95 = vector.load %arg7[%c0_55, %c0_56, %c192] : memref<1x5x1024xf32, #tpu.memory_space<vmem>>, vector<1x5x32xf32>
    %96 = vector.shape_cast %95 : vector<1x5x32xf32> to vector<5x32xf32>
    %97 = vector.shape_cast %94 : vector<5x32xf32> to vector<1x5x32xf32>
    tpu.vector_store %arg7[%c0_55, %c0_56, %c192], %97 {strides = array<i32>} : memref<1x5x1024xf32, #tpu.memory_space<vmem>>, vector<1x5x32xf32>,
    %cst_57 = arith.constant 7.500000e-01 : f32
    %98 = vector.broadcast %cst_57 : f32 to vector<5x32xf32>
    %99 = arith.mulf %98, %22 : vector<5x32xf32>
    %cst_58 = arith.constant 2.500000e-01 : f32
    %100 = vector.broadcast %cst_58 : f32 to vector<5x32xf32>
    %101 = arith.mulf %100, %24 : vector<5x32xf32>
    %102 = arith.addf %99, %101 : vector<5x32xf32>
    %c0_59 = arith.constant 0 : index
    %c0_60 = arith.constant 0 : index
    %c224 = arith.constant 224 : index
    %103 = vector.load %arg7[%c0_59, %c0_60, %c224] : memref<1x5x1024xf32, #tpu.memory_space<vmem>>, vector<1x5x32xf32>
    %104 = vector.shape_cast %103 : vector<1x5x32xf32> to vector<5x32xf32>
    %105 = vector.shape_cast %102 : vector<5x32xf32> to vector<1x5x32xf32>
    tpu.vector_store %arg7[%c0_59, %c0_60, %c224], %105 {strides = array<i32>} : memref<1x5x1024xf32, #tpu.memory_space<vmem>>, vector<1x5x32xf32>,
    %cst_61 = arith.constant 2.500000e-01 : f32
    %106 = vector.broadcast %cst_61 : f32 to vector<5x32xf32>
    %107 = arith.mulf %106, %22 : vector<5x32xf32>
    %cst_62 = arith.constant 7.500000e-01 : f32
    %108 = vector.broadcast %cst_62 : f32 to vector<5x32xf32>
    %109 = arith.mulf %108, %24 : vector<5x32xf32>
    %110 = arith.addf %107, %109 : vector<5x32xf32>
    %c0_63 = arith.constant 0 : index
    %c0_64 = arith.constant 0 : index
    %c256 = arith.constant 256 : index
    %111 = vector.load %arg7[%c0_63, %c0_64, %c256] : memref<1x5x1024xf32, #tpu.memory_space<vmem>>, vector<1x5x32xf32>
    %112 = vector.shape_cast %111 : vector<1x5x32xf32> to vector<5x32xf32>
    %113 = vector.shape_cast %110 : vector<5x32xf32> to vector<1x5x32xf32>
    tpu.vector_store %arg7[%c0_63, %c0_64, %c256], %113 {strides = array<i32>} : memref<1x5x1024xf32, #tpu.memory_space<vmem>>, vector<1x5x32xf32>,
    %cst_65 = arith.constant 7.500000e-01 : f32
    %114 = vector.broadcast %cst_65 : f32 to vector<5x32xf32>
    %115 = arith.mulf %114, %24 : vector<5x32xf32>
    %cst_66 = arith.constant 2.500000e-01 : f32
    %116 = vector.broadcast %cst_66 : f32 to vector<5x32xf32>
    %117 = arith.mulf %116, %26 : vector<5x32xf32>
    %118 = arith.addf %115, %117 : vector<5x32xf32>
    %c0_67 = arith.constant 0 : index
    %c0_68 = arith.constant 0 : index
    %c288 = arith.constant 288 : index
    %119 = vector.load %arg7[%c0_67, %c0_68, %c288] : memref<1x5x1024xf32, #tpu.memory_space<vmem>>, vector<1x5x32xf32>
    %120 = vector.shape_cast %119 : vector<1x5x32xf32> to vector<5x32xf32>
    %121 = vector.shape_cast %118 : vector<5x32xf32> to vector<1x5x32xf32>
    tpu.vector_store %arg7[%c0_67, %c0_68, %c288], %121 {strides = array<i32>} : memref<1x5x1024xf32, #tpu.memory_space<vmem>>, vector<1x5x32xf32>,
    %cst_69 = arith.constant 2.500000e-01 : f32
    %122 = vector.broadcast %cst_69 : f32 to vector<5x32xf32>
    %123 = arith.mulf %122, %24 : vector<5x32xf32>
    %cst_70 = arith.constant 7.500000e-01 : f32
    %124 = vector.broadcast %cst_70 : f32 to vector<5x32xf32>
    %125 = arith.mulf %124, %26 : vector<5x32xf32>
    %126 = arith.addf %123, %125 : vector<5x32xf32>
    %c0_71 = arith.constant 0 : index
    %c0_72 = arith.constant 0 : index
    %c320 = arith.constant 320 : index
    %127 = vector.load %arg7[%c0_71, %c0_72, %c320] : memref<1x5x1024xf32, #tpu.memory_space<vmem>>, vector<1x5x32xf32>
    %128 = vector.shape_cast %127 : vector<1x5x32xf32> to vector<5x32xf32>
    %129 = vector.shape_cast %126 : vector<5x32xf32> to vector<1x5x32xf32>
    tpu.vector_store %arg7[%c0_71, %c0_72, %c320], %129 {strides = array<i32>} : memref<1x5x1024xf32, #tpu.memory_space<vmem>>, vector<1x5x32xf32>,
    %cst_73 = arith.constant 7.500000e-01 : f32
    %130 = vector.broadcast %cst_73 : f32 to vector<5x32xf32>
    %131 = arith.mulf %130, %26 : vector<5x32xf32>
    %cst_74 = arith.constant 2.500000e-01 : f32
    %132 = vector.broadcast %cst_74 : f32 to vector<5x32xf32>
    %133 = arith.mulf %132, %28 : vector<5x32xf32>
    %134 = arith.addf %131, %133 : vector<5x32xf32>
    %c0_75 = arith.constant 0 : index
    %c0_76 = arith.constant 0 : index
    %c352 = arith.constant 352 : index
    %135 = vector.load %arg7[%c0_75, %c0_76, %c352] : memref<1x5x1024xf32, #tpu.memory_space<vmem>>, vector<1x5x32xf32>
    %136 = vector.shape_cast %135 : vector<1x5x32xf32> to vector<5x32xf32>
    %137 = vector.shape_cast %134 : vector<5x32xf32> to vector<1x5x32xf32>
    tpu.vector_store %arg7[%c0_75, %c0_76, %c352], %137 {strides = array<i32>} : memref<1x5x1024xf32, #tpu.memory_space<vmem>>, vector<1x5x32xf32>,
    %cst_77 = arith.constant 2.500000e-01 : f32
    %138 = vector.broadcast %cst_77 : f32 to vector<5x32xf32>
    %139 = arith.mulf %138, %26 : vector<5x32xf32>
    %cst_78 = arith.constant 7.500000e-01 : f32
    %140 = vector.broadcast %cst_78 : f32 to vector<5x32xf32>
    %141 = arith.mulf %140, %28 : vector<5x32xf32>
    %142 = arith.addf %139, %141 : vector<5x32xf32>
    %c0_79 = arith.constant 0 : index
    %c0_80 = arith.constant 0 : index
    %c384 = arith.constant 384 : index
    %143 = vector.load %arg7[%c0_79, %c0_80, %c384] : memref<1x5x1024xf32, #tpu.memory_space<vmem>>, vector<1x5x32xf32>
    %144 = vector.shape_cast %143 : vector<1x5x32xf32> to vector<5x32xf32>
    %145 = vector.shape_cast %142 : vector<5x32xf32> to vector<1x5x32xf32>
    tpu.vector_store %arg7[%c0_79, %c0_80, %c384], %145 {strides = array<i32>} : memref<1x5x1024xf32, #tpu.memory_space<vmem>>, vector<1x5x32xf32>,
    %cst_81 = arith.constant 7.500000e-01 : f32
    %146 = vector.broadcast %cst_81 : f32 to vector<5x32xf32>
    %147 = arith.mulf %146, %28 : vector<5x32xf32>
    %cst_82 = arith.constant 2.500000e-01 : f32
    %148 = vector.broadcast %cst_82 : f32 to vector<5x32xf32>
    %149 = arith.mulf %148, %30 : vector<5x32xf32>
    %150 = arith.addf %147, %149 : vector<5x32xf32>
    %c0_83 = arith.constant 0 : index
    %c0_84 = arith.constant 0 : index
    %c416 = arith.constant 416 : index
    %151 = vector.load %arg7[%c0_83, %c0_84, %c416] : memref<1x5x1024xf32, #tpu.memory_space<vmem>>, vector<1x5x32xf32>
    %152 = vector.shape_cast %151 : vector<1x5x32xf32> to vector<5x32xf32>
    %153 = vector.shape_cast %150 : vector<5x32xf32> to vector<1x5x32xf32>
    tpu.vector_store %arg7[%c0_83, %c0_84, %c416], %153 {strides = array<i32>} : memref<1x5x1024xf32, #tpu.memory_space<vmem>>, vector<1x5x32xf32>,
    %cst_85 = arith.constant 2.500000e-01 : f32
    %154 = vector.broadcast %cst_85 : f32 to vector<5x32xf32>
    %155 = arith.mulf %154, %28 : vector<5x32xf32>
    %cst_86 = arith.constant 7.500000e-01 : f32
    %156 = vector.broadcast %cst_86 : f32 to vector<5x32xf32>
    %157 = arith.mulf %156, %30 : vector<5x32xf32>
    %158 = arith.addf %155, %157 : vector<5x32xf32>
    %c0_87 = arith.constant 0 : index
    %c0_88 = arith.constant 0 : index
    %c448 = arith.constant 448 : index
    %159 = vector.load %arg7[%c0_87, %c0_88, %c448] : memref<1x5x1024xf32, #tpu.memory_space<vmem>>, vector<1x5x32xf32>
    %160 = vector.shape_cast %159 : vector<1x5x32xf32> to vector<5x32xf32>
    %161 = vector.shape_cast %158 : vector<5x32xf32> to vector<1x5x32xf32>
    tpu.vector_store %arg7[%c0_87, %c0_88, %c448], %161 {strides = array<i32>} : memref<1x5x1024xf32, #tpu.memory_space<vmem>>, vector<1x5x32xf32>,
    %cst_89 = arith.constant 7.500000e-01 : f32
    %162 = vector.broadcast %cst_89 : f32 to vector<5x32xf32>
    %163 = arith.mulf %162, %30 : vector<5x32xf32>
    %cst_90 = arith.constant 2.500000e-01 : f32
    %164 = vector.broadcast %cst_90 : f32 to vector<5x32xf32>
    %165 = arith.mulf %164, %32 : vector<5x32xf32>
    %166 = arith.addf %163, %165 : vector<5x32xf32>
    %c0_91 = arith.constant 0 : index
    %c0_92 = arith.constant 0 : index
    %c480 = arith.constant 480 : index
    %167 = vector.load %arg7[%c0_91, %c0_92, %c480] : memref<1x5x1024xf32, #tpu.memory_space<vmem>>, vector<1x5x32xf32>
    %168 = vector.shape_cast %167 : vector<1x5x32xf32> to vector<5x32xf32>
    %169 = vector.shape_cast %166 : vector<5x32xf32> to vector<1x5x32xf32>
    tpu.vector_store %arg7[%c0_91, %c0_92, %c480], %169 {strides = array<i32>} : memref<1x5x1024xf32, #tpu.memory_space<vmem>>, vector<1x5x32xf32>,
    %cst_93 = arith.constant 2.500000e-01 : f32
    %170 = vector.broadcast %cst_93 : f32 to vector<5x32xf32>
    %171 = arith.mulf %170, %30 : vector<5x32xf32>
    %cst_94 = arith.constant 7.500000e-01 : f32
    %172 = vector.broadcast %cst_94 : f32 to vector<5x32xf32>
    %173 = arith.mulf %172, %32 : vector<5x32xf32>
    %174 = arith.addf %171, %173 : vector<5x32xf32>
    %c0_95 = arith.constant 0 : index
    %c0_96 = arith.constant 0 : index
    %c512 = arith.constant 512 : index
    %175 = vector.load %arg7[%c0_95, %c0_96, %c512] : memref<1x5x1024xf32, #tpu.memory_space<vmem>>, vector<1x5x32xf32>
    %176 = vector.shape_cast %175 : vector<1x5x32xf32> to vector<5x32xf32>
    %177 = vector.shape_cast %174 : vector<5x32xf32> to vector<1x5x32xf32>
    tpu.vector_store %arg7[%c0_95, %c0_96, %c512], %177 {strides = array<i32>} : memref<1x5x1024xf32, #tpu.memory_space<vmem>>, vector<1x5x32xf32>,
    %cst_97 = arith.constant 7.500000e-01 : f32
    %178 = vector.broadcast %cst_97 : f32 to vector<5x32xf32>
    %179 = arith.mulf %178, %32 : vector<5x32xf32>
    %cst_98 = arith.constant 2.500000e-01 : f32
    %180 = vector.broadcast %cst_98 : f32 to vector<5x32xf32>
    %181 = arith.mulf %180, %34 : vector<5x32xf32>
    %182 = arith.addf %179, %181 : vector<5x32xf32>
    %c0_99 = arith.constant 0 : index
    %c0_100 = arith.constant 0 : index
    %c544 = arith.constant 544 : index
    %183 = vector.load %arg7[%c0_99, %c0_100, %c544] : memref<1x5x1024xf32, #tpu.memory_space<vmem>>, vector<1x5x32xf32>
    %184 = vector.shape_cast %183 : vector<1x5x32xf32> to vector<5x32xf32>
    %185 = vector.shape_cast %182 : vector<5x32xf32> to vector<1x5x32xf32>
    tpu.vector_store %arg7[%c0_99, %c0_100, %c544], %185 {strides = array<i32>} : memref<1x5x1024xf32, #tpu.memory_space<vmem>>, vector<1x5x32xf32>,
    %cst_101 = arith.constant 2.500000e-01 : f32
    %186 = vector.broadcast %cst_101 : f32 to vector<5x32xf32>
    %187 = arith.mulf %186, %32 : vector<5x32xf32>
    %cst_102 = arith.constant 7.500000e-01 : f32
    %188 = vector.broadcast %cst_102 : f32 to vector<5x32xf32>
    %189 = arith.mulf %188, %34 : vector<5x32xf32>
    %190 = arith.addf %187, %189 : vector<5x32xf32>
    %c0_103 = arith.constant 0 : index
    %c0_104 = arith.constant 0 : index
    %c576 = arith.constant 576 : index
    %191 = vector.load %arg7[%c0_103, %c0_104, %c576] : memref<1x5x1024xf32, #tpu.memory_space<vmem>>, vector<1x5x32xf32>
    %192 = vector.shape_cast %191 : vector<1x5x32xf32> to vector<5x32xf32>
    %193 = vector.shape_cast %190 : vector<5x32xf32> to vector<1x5x32xf32>
    tpu.vector_store %arg7[%c0_103, %c0_104, %c576], %193 {strides = array<i32>} : memref<1x5x1024xf32, #tpu.memory_space<vmem>>, vector<1x5x32xf32>,
    %cst_105 = arith.constant 7.500000e-01 : f32
    %194 = vector.broadcast %cst_105 : f32 to vector<5x32xf32>
    %195 = arith.mulf %194, %34 : vector<5x32xf32>
    %cst_106 = arith.constant 2.500000e-01 : f32
    %196 = vector.broadcast %cst_106 : f32 to vector<5x32xf32>
    %197 = arith.mulf %196, %36 : vector<5x32xf32>
    %198 = arith.addf %195, %197 : vector<5x32xf32>
    %c0_107 = arith.constant 0 : index
    %c0_108 = arith.constant 0 : index
    %c608 = arith.constant 608 : index
    %199 = vector.load %arg7[%c0_107, %c0_108, %c608] : memref<1x5x1024xf32, #tpu.memory_space<vmem>>, vector<1x5x32xf32>
    %200 = vector.shape_cast %199 : vector<1x5x32xf32> to vector<5x32xf32>
    %201 = vector.shape_cast %198 : vector<5x32xf32> to vector<1x5x32xf32>
    tpu.vector_store %arg7[%c0_107, %c0_108, %c608], %201 {strides = array<i32>} : memref<1x5x1024xf32, #tpu.memory_space<vmem>>, vector<1x5x32xf32>,
    %cst_109 = arith.constant 2.500000e-01 : f32
    %202 = vector.broadcast %cst_109 : f32 to vector<5x32xf32>
    %203 = arith.mulf %202, %34 : vector<5x32xf32>
    %cst_110 = arith.constant 7.500000e-01 : f32
    %204 = vector.broadcast %cst_110 : f32 to vector<5x32xf32>
    %205 = arith.mulf %204, %36 : vector<5x32xf32>
    %206 = arith.addf %203, %205 : vector<5x32xf32>
    %c0_111 = arith.constant 0 : index
    %c0_112 = arith.constant 0 : index
    %c640 = arith.constant 640 : index
    %207 = vector.load %arg7[%c0_111, %c0_112, %c640] : memref<1x5x1024xf32, #tpu.memory_space<vmem>>, vector<1x5x32xf32>
    %208 = vector.shape_cast %207 : vector<1x5x32xf32> to vector<5x32xf32>
    %209 = vector.shape_cast %206 : vector<5x32xf32> to vector<1x5x32xf32>
    tpu.vector_store %arg7[%c0_111, %c0_112, %c640], %209 {strides = array<i32>} : memref<1x5x1024xf32, #tpu.memory_space<vmem>>, vector<1x5x32xf32>,
    %cst_113 = arith.constant 7.500000e-01 : f32
    %210 = vector.broadcast %cst_113 : f32 to vector<5x32xf32>
    %211 = arith.mulf %210, %36 : vector<5x32xf32>
    %cst_114 = arith.constant 2.500000e-01 : f32
    %212 = vector.broadcast %cst_114 : f32 to vector<5x32xf32>
    %213 = arith.mulf %212, %38 : vector<5x32xf32>
    %214 = arith.addf %211, %213 : vector<5x32xf32>
    %c0_115 = arith.constant 0 : index
    %c0_116 = arith.constant 0 : index
    %c672 = arith.constant 672 : index
    %215 = vector.load %arg7[%c0_115, %c0_116, %c672] : memref<1x5x1024xf32, #tpu.memory_space<vmem>>, vector<1x5x32xf32>
    %216 = vector.shape_cast %215 : vector<1x5x32xf32> to vector<5x32xf32>
    %217 = vector.shape_cast %214 : vector<5x32xf32> to vector<1x5x32xf32>
    tpu.vector_store %arg7[%c0_115, %c0_116, %c672], %217 {strides = array<i32>} : memref<1x5x1024xf32, #tpu.memory_space<vmem>>, vector<1x5x32xf32>,
    %cst_117 = arith.constant 2.500000e-01 : f32
    %218 = vector.broadcast %cst_117 : f32 to vector<5x32xf32>
    %219 = arith.mulf %218, %36 : vector<5x32xf32>
    %cst_118 = arith.constant 7.500000e-01 : f32
    %220 = vector.broadcast %cst_118 : f32 to vector<5x32xf32>
    %221 = arith.mulf %220, %38 : vector<5x32xf32>
    %222 = arith.addf %219, %221 : vector<5x32xf32>
    %c0_119 = arith.constant 0 : index
    %c0_120 = arith.constant 0 : index
    %c704 = arith.constant 704 : index
    %223 = vector.load %arg7[%c0_119, %c0_120, %c704] : memref<1x5x1024xf32, #tpu.memory_space<vmem>>, vector<1x5x32xf32>
    %224 = vector.shape_cast %223 : vector<1x5x32xf32> to vector<5x32xf32>
    %225 = vector.shape_cast %222 : vector<5x32xf32> to vector<1x5x32xf32>
    tpu.vector_store %arg7[%c0_119, %c0_120, %c704], %225 {strides = array<i32>} : memref<1x5x1024xf32, #tpu.memory_space<vmem>>, vector<1x5x32xf32>,
    %cst_121 = arith.constant 7.500000e-01 : f32
    %226 = vector.broadcast %cst_121 : f32 to vector<5x32xf32>
    %227 = arith.mulf %226, %38 : vector<5x32xf32>
    %cst_122 = arith.constant 2.500000e-01 : f32
    %228 = vector.broadcast %cst_122 : f32 to vector<5x32xf32>
    %229 = arith.mulf %228, %40 : vector<5x32xf32>
    %230 = arith.addf %227, %229 : vector<5x32xf32>
    %c0_123 = arith.constant 0 : index
    %c0_124 = arith.constant 0 : index
    %c736 = arith.constant 736 : index
    %231 = vector.load %arg7[%c0_123, %c0_124, %c736] : memref<1x5x1024xf32, #tpu.memory_space<vmem>>, vector<1x5x32xf32>
    %232 = vector.shape_cast %231 : vector<1x5x32xf32> to vector<5x32xf32>
    %233 = vector.shape_cast %230 : vector<5x32xf32> to vector<1x5x32xf32>
    tpu.vector_store %arg7[%c0_123, %c0_124, %c736], %233 {strides = array<i32>} : memref<1x5x1024xf32, #tpu.memory_space<vmem>>, vector<1x5x32xf32>,
    %cst_125 = arith.constant 2.500000e-01 : f32
    %234 = vector.broadcast %cst_125 : f32 to vector<5x32xf32>
    %235 = arith.mulf %234, %38 : vector<5x32xf32>
    %cst_126 = arith.constant 7.500000e-01 : f32
    %236 = vector.broadcast %cst_126 : f32 to vector<5x32xf32>
    %237 = arith.mulf %236, %40 : vector<5x32xf32>
    %238 = arith.addf %235, %237 : vector<5x32xf32>
    %c0_127 = arith.constant 0 : index
    %c0_128 = arith.constant 0 : index
    %c768 = arith.constant 768 : index
    %239 = vector.load %arg7[%c0_127, %c0_128, %c768] : memref<1x5x1024xf32, #tpu.memory_space<vmem>>, vector<1x5x32xf32>
    %240 = vector.shape_cast %239 : vector<1x5x32xf32> to vector<5x32xf32>
    %241 = vector.shape_cast %238 : vector<5x32xf32> to vector<1x5x32xf32>
    tpu.vector_store %arg7[%c0_127, %c0_128, %c768], %241 {strides = array<i32>} : memref<1x5x1024xf32, #tpu.memory_space<vmem>>, vector<1x5x32xf32>,
    %cst_129 = arith.constant 7.500000e-01 : f32
    %242 = vector.broadcast %cst_129 : f32 to vector<5x32xf32>
    %243 = arith.mulf %242, %40 : vector<5x32xf32>
    %cst_130 = arith.constant 2.500000e-01 : f32
    %244 = vector.broadcast %cst_130 : f32 to vector<5x32xf32>
    %245 = arith.mulf %244, %42 : vector<5x32xf32>
    %246 = arith.addf %243, %245 : vector<5x32xf32>
    %c0_131 = arith.constant 0 : index
    %c0_132 = arith.constant 0 : index
    %c800 = arith.constant 800 : index
    %247 = vector.load %arg7[%c0_131, %c0_132, %c800] : memref<1x5x1024xf32, #tpu.memory_space<vmem>>, vector<1x5x32xf32>
    %248 = vector.shape_cast %247 : vector<1x5x32xf32> to vector<5x32xf32>
    %249 = vector.shape_cast %246 : vector<5x32xf32> to vector<1x5x32xf32>
    tpu.vector_store %arg7[%c0_131, %c0_132, %c800], %249 {strides = array<i32>} : memref<1x5x1024xf32, #tpu.memory_space<vmem>>, vector<1x5x32xf32>,
    %cst_133 = arith.constant 2.500000e-01 : f32
    %250 = vector.broadcast %cst_133 : f32 to vector<5x32xf32>
    %251 = arith.mulf %250, %40 : vector<5x32xf32>
    %cst_134 = arith.constant 7.500000e-01 : f32
    %252 = vector.broadcast %cst_134 : f32 to vector<5x32xf32>
    %253 = arith.mulf %252, %42 : vector<5x32xf32>
    %254 = arith.addf %251, %253 : vector<5x32xf32>
    %c0_135 = arith.constant 0 : index
    %c0_136 = arith.constant 0 : index
    %c832 = arith.constant 832 : index
    %255 = vector.load %arg7[%c0_135, %c0_136, %c832] : memref<1x5x1024xf32, #tpu.memory_space<vmem>>, vector<1x5x32xf32>
    %256 = vector.shape_cast %255 : vector<1x5x32xf32> to vector<5x32xf32>
    %257 = vector.shape_cast %254 : vector<5x32xf32> to vector<1x5x32xf32>
    tpu.vector_store %arg7[%c0_135, %c0_136, %c832], %257 {strides = array<i32>} : memref<1x5x1024xf32, #tpu.memory_space<vmem>>, vector<1x5x32xf32>,
    %cst_137 = arith.constant 7.500000e-01 : f32
    %258 = vector.broadcast %cst_137 : f32 to vector<5x32xf32>
    %259 = arith.mulf %258, %42 : vector<5x32xf32>
    %cst_138 = arith.constant 2.500000e-01 : f32
    %260 = vector.broadcast %cst_138 : f32 to vector<5x32xf32>
    %261 = arith.mulf %260, %44 : vector<5x32xf32>
    %262 = arith.addf %259, %261 : vector<5x32xf32>
    %c0_139 = arith.constant 0 : index
    %c0_140 = arith.constant 0 : index
    %c864 = arith.constant 864 : index
    %263 = vector.load %arg7[%c0_139, %c0_140, %c864] : memref<1x5x1024xf32, #tpu.memory_space<vmem>>, vector<1x5x32xf32>
    %264 = vector.shape_cast %263 : vector<1x5x32xf32> to vector<5x32xf32>
    %265 = vector.shape_cast %262 : vector<5x32xf32> to vector<1x5x32xf32>
    tpu.vector_store %arg7[%c0_139, %c0_140, %c864], %265 {strides = array<i32>} : memref<1x5x1024xf32, #tpu.memory_space<vmem>>, vector<1x5x32xf32>,
    %cst_141 = arith.constant 2.500000e-01 : f32
    %266 = vector.broadcast %cst_141 : f32 to vector<5x32xf32>
    %267 = arith.mulf %266, %42 : vector<5x32xf32>
    %cst_142 = arith.constant 7.500000e-01 : f32
    %268 = vector.broadcast %cst_142 : f32 to vector<5x32xf32>
    %269 = arith.mulf %268, %44 : vector<5x32xf32>
    %270 = arith.addf %267, %269 : vector<5x32xf32>
    %c0_143 = arith.constant 0 : index
    %c0_144 = arith.constant 0 : index
    %c896 = arith.constant 896 : index
    %271 = vector.load %arg7[%c0_143, %c0_144, %c896] : memref<1x5x1024xf32, #tpu.memory_space<vmem>>, vector<1x5x32xf32>
    %272 = vector.shape_cast %271 : vector<1x5x32xf32> to vector<5x32xf32>
    %273 = vector.shape_cast %270 : vector<5x32xf32> to vector<1x5x32xf32>
    tpu.vector_store %arg7[%c0_143, %c0_144, %c896], %273 {strides = array<i32>} : memref<1x5x1024xf32, #tpu.memory_space<vmem>>, vector<1x5x32xf32>,
    %cst_145 = arith.constant 7.500000e-01 : f32
    %274 = vector.broadcast %cst_145 : f32 to vector<5x32xf32>
    %275 = arith.mulf %274, %44 : vector<5x32xf32>
    %cst_146 = arith.constant 2.500000e-01 : f32
    %276 = vector.broadcast %cst_146 : f32 to vector<5x32xf32>
    %277 = arith.mulf %276, %46 : vector<5x32xf32>
    %278 = arith.addf %275, %277 : vector<5x32xf32>
    %c0_147 = arith.constant 0 : index
    %c0_148 = arith.constant 0 : index
    %c928 = arith.constant 928 : index
    %279 = vector.load %arg7[%c0_147, %c0_148, %c928] : memref<1x5x1024xf32, #tpu.memory_space<vmem>>, vector<1x5x32xf32>
    %280 = vector.shape_cast %279 : vector<1x5x32xf32> to vector<5x32xf32>
    %281 = vector.shape_cast %278 : vector<5x32xf32> to vector<1x5x32xf32>
    tpu.vector_store %arg7[%c0_147, %c0_148, %c928], %281 {strides = array<i32>} : memref<1x5x1024xf32, #tpu.memory_space<vmem>>, vector<1x5x32xf32>,
    %cst_149 = arith.constant 2.500000e-01 : f32
    %282 = vector.broadcast %cst_149 : f32 to vector<5x32xf32>
    %283 = arith.mulf %282, %44 : vector<5x32xf32>
    %cst_150 = arith.constant 7.500000e-01 : f32
    %284 = vector.broadcast %cst_150 : f32 to vector<5x32xf32>
    %285 = arith.mulf %284, %46 : vector<5x32xf32>
    %286 = arith.addf %283, %285 : vector<5x32xf32>
    %c0_151 = arith.constant 0 : index
    %c0_152 = arith.constant 0 : index
    %c960 = arith.constant 960 : index
    %287 = vector.load %arg7[%c0_151, %c0_152, %c960] : memref<1x5x1024xf32, #tpu.memory_space<vmem>>, vector<1x5x32xf32>
    %288 = vector.shape_cast %287 : vector<1x5x32xf32> to vector<5x32xf32>
    %289 = vector.shape_cast %286 : vector<5x32xf32> to vector<1x5x32xf32>
    tpu.vector_store %arg7[%c0_151, %c0_152, %c960], %289 {strides = array<i32>} : memref<1x5x1024xf32, #tpu.memory_space<vmem>>, vector<1x5x32xf32>,
    %c0_153 = arith.constant 0 : index
    %c0_154 = arith.constant 0 : index
    %c992 = arith.constant 992 : index
    %290 = vector.load %arg7[%c0_153, %c0_154, %c992] : memref<1x5x1024xf32, #tpu.memory_space<vmem>>, vector<1x5x32xf32>
    %291 = vector.shape_cast %290 : vector<1x5x32xf32> to vector<5x32xf32>
    %292 = vector.shape_cast %46 : vector<5x32xf32> to vector<1x5x32xf32>
    tpu.vector_store %arg7[%c0_153, %c0_154, %c992], %292 {strides = array<i32>} : memref<1x5x1024xf32, #tpu.memory_space<vmem>>, vector<1x5x32xf32>,
    return
  }
  func.func @transform_0(%arg0: i32) -> (i32, i32, i32) {
    %c0_i32 = arith.constant 0 : i32
    %c0_i32_0 = arith.constant 0 : i32
    %c0_i32_1 = arith.constant 0 : i32
    return %arg0, %c0_i32, %c0_i32_0 : i32, i32, i32
  }
  func.func @transform_1(%arg0: i32) -> (i32, i32) {
    %c0_i32 = arith.constant 0 : i32
    %c0_i32_0 = arith.constant 0 : i32
    %c0_i32_1 = arith.constant 0 : i32
    return %c0_i32, %c0_i32_0 : i32, i32
  }
  func.func @transform_2(%arg0: i32) -> (i32, i32) {
    %c0_i32 = arith.constant 0 : i32
    %c0_i32_0 = arith.constant 0 : i32
    %c0_i32_1 = arith.constant 0 : i32
    return %c0_i32, %c0_i32_0 : i32, i32
  }
  func.func @transform_3(%arg0: i32) -> (i32, i32) {
    %c0_i32 = arith.constant 0 : i32
    %c0_i32_0 = arith.constant 0 : i32
    %c0_i32_1 = arith.constant 0 : i32
    return %c0_i32, %c0_i32_0 : i32, i32
  }
  func.func @transform_4(%arg0: i32) -> (i32, i32) {
    %c0_i32 = arith.constant 0 : i32
    %c0_i32_0 = arith.constant 0 : i32
    %c0_i32_1 = arith.constant 0 : i32
    return %c0_i32, %c0_i32_0 : i32, i32
  }
  func.func @transform_5(%arg0: i32) -> (i32, i32) {
    %c0_i32 = arith.constant 0 : i32
    %c0_i32_0 = arith.constant 0 : i32
    %c0_i32_1 = arith.constant 0 : i32
    return %c0_i32, %c0_i32_0 : i32, i32
  }
  func.func @transform_6(%arg0: i32) -> (i32, i32, i32) {
    %c0_i32 = arith.constant 0 : i32
    %c0_i32_0 = arith.constant 0 : i32
    %c0_i32_1 = arith.constant 0 : i32
    return %arg0, %c0_i32, %c0_i32_0 : i32, i32, i32
  }
}

</mosaic_0001>

<bundles_post_ra>
// kernel: auxiliary_branch_forward.1
= control target key start
LH: loop header
LB: loop body
LE: loop exit
PB: predicated region body
PF: predicated region fallthrough
CT: control target
= control target key end

     0   :  { %s2719_s21 = smov 0   ;;  %s3328_s0 = inlined_call_operand.vmem [shape: f32[2,36,256], index: 0, kind: input, shape index: {}]   ;;  %s3329_s1 = inlined_call_operand.vmem [shape: f32[256,36], index: 1, kind: input, shape index: {}]   ;;  %s3330_s2 = inlined_call_operand.vmem [shape: f32[256,1], index: 2, kind: input, shape index: {}]   ;;  %s3331_s3 = inlined_call_operand.vmem [shape: f32[5,256], index: 3, kind: input, shape index: {}]   ;;  %s3332_s4 = inlined_call_operand.vmem [shape: f32[5,1], index: 4, kind: input, shape index: {}]   ;;  %s3333_s5 = inlined_call_operand.vmem [shape: f32[16,32], index: 5, kind: input, shape index: {}]   ;;  %s3334_s6 = inlined_call_operand.vmem [shape: f32[2,5,1024], index: 6, kind: output, shape index: {}]  }
   0x1 LB: > { %s2424_s22 = sadd.s32 4294967295, %s2672_s21   ;;  %p2428_p0 = scmp.ge.s32.totalorder %s2672_s21, 1  ;;  %s2672_s21 = sphi %s2719_s21, %s16_s21  }
   0x2   : > { %p212_p1 = scmp.lt.s32.totalorder %s2672_s21, 3 }
   0x4   : > { %p213_p2 = pnand %p2428_p0, %p212_p1 }
   0x5   : > { %p242_p3 = scmp.lt.s32.totalorder (!%p213_p2), %s2424_s22, 1  ;;  %s2677_s9 = smov (!%p213_p2), 96  }
   0x6   : > { %216 = sbr.rel (%p213_p2) target bundleno = 1068 (0x42c), region = 44  ;;  %s2678_s10 = smov (!%p213_p2), 112  }
   0x7   : > { %s2679_s11 = smov (!%p213_p2), 64   ;;  %s2680_s12 = smov (!%p213_p2), 80  }
   0x8   : > { %s2681_s13 = smov (!%p213_p2), 32   ;;  %s2682_s14 = smov (!%p213_p2), 48  }
   0x9   : > { %s2683_s15 = smov (!%p213_p2), 16  }
   0xb   : > { %v2674_v0 = vmov 0.0   ;;  %s3336_s22 = smov (!%p242_p3, %s2424_s22), 1  ;;  %v2675_v1 = vmov 0   ;;  %v307_v2 = vld [vmem:[%s3330_s2 + $0x68] sm:$0xff]  ;;  %v309_v3 = vld [vmem:[%s3330_s2 + $0x78] sm:$0xff]  ;;  %vm583_vm0 = vcmask 1043456  }
   0xc   : > { %654 = vmatprep.mubr.f32.mxu0 %v2674_v0  ;;  %2665 = vset.pattern.permute.xlu1 %v2675_v1  ;;  %s2645_s23 = smul.u32 80, %s3336_s22  ;;  %v306_v4 = vld [vmem:[%s3330_s2 + $0x60] sm:$0xff]  ;;  %v308_v5 = vld [vmem:[%s3330_s2 + $0x70] sm:$0xff]  ;;  %v305_v14 = vld [vmem:[%s3330_s2 + $0x58] sm:$0xff]  ;;  %vm486_vm1 = vcmask 293888   ;;  %vm2676_vm2 = vmmov 0  }
   0xd   : > { %2664 = vset.pattern.permute.xlu0 %v2675_v1  ;;  %393 = vperm.xlu1 %2665, %v307_v2   ;;  %v304_v12 = vld [vmem:[%s3330_s2 + $0x50] sm:$0xff]  ;;  %v302_v18 = vld [vmem:[%s3330_s2 + $0x40] sm:$0xff]  ;;  %v303_v20 = vld [vmem:[%s3330_s2 + $0x48] sm:$0xff]  ;;  %vm992_vm3 = vcmask 130048   ;;  %s2484_s16 = sshll.u32 %s3336_s22, 6  ;;  %vm2175_vm4 = vcmask 258048  }
   0xe   : > { %403 = vperm.xlu0 %2664, %v309_v3   ;;  %s246_s30 = scalar_lea.vmem %s3328_s0, %s2645_s23  ;;  %v262_v19 = vld [vmem:[%s3329_s1] sm:$0xff]  ;;  %v300_v21 = vld [vmem:[%s3330_s2 + $0x30] sm:$0xff]  ;;  %v263_v22 = vld [vmem:[%s3329_s1 + $0x8] sm:$0xff]  ;;  %s3235_s19 = scalar_lea.vmem %s3334_s6, %s2484_s16  ;;  %vm2184_vm5 = vcmask 520448   ;;  %vm2193_vm6 = vcmask 782848   ;;  %vm2201_vm7 = vcmask 1045248  }
   0xf   : > { %v261_v6 = vld [vmem:[%s246_s30 + $0x48] sm:$0xf]  ;;  %v260_v7 = vld [vmem:[%s246_s30 + $0x40] sm:$0xf]  ;;  %v259_v8 = vld [vmem:[%s246_s30 + $0x38] sm:$0xff] }
  0x10   : > { %2432 = vmatprep.subr.msk.mxu0 %vm583_vm0, %v261_v6  ;;  %v258_v9 = vld [vmem:[%s246_s30 + $0x30] sm:$0xff]  ;;  %v257_v10 = vld [vmem:[%s246_s30 + $0x28] sm:$0xff]  ;;  %v256_v11 = vld [vmem:[%s246_s30 + $0x20] sm:$0xff] }
  0x11   : > { %2433 = vmatpush1.msk.msra.mxu0 %vm583_vm0, %v260_v7  ;;  %388 = vperm.xlu1 %2665, %v306_v4   ;;  %v255_v13 = vld [vmem:[%s246_s30 + $0x18] sm:$0xff]  ;;  %v254_v15 = vld [vmem:[%s246_s30 + $0x10] sm:$0xff]  ;;  %v253_v16 = vld [vmem:[%s246_s30 + $0x8] sm:$0xff] }
  0x12   : > { %614 = vmatprep.subr.mxu0 %v259_v8  ;;  %398 = vperm.xlu0 %2664, %v308_v5   ;;  %v252_v17 = vld [vmem:[%s246_s30] sm:$0xff]  ;;  %v301_v23 = vld [vmem:[%s3330_s2 + $0x38] sm:$0xff]  ;;  %v264_v25 = vld [vmem:[%s3329_s1 + $0x10] sm:$0xff] }
  0x13   : > { %615 = vmatpush1.msra.mxu0 %v258_v9  ;;  %v298_v24 = vld [vmem:[%s3330_s2 + $0x20] sm:$0xff]  ;;  %v299_v26 = vld [vmem:[%s3330_s2 + $0x28] sm:$0xff]  ;;  %v296_v27 = vld [vmem:[%s3330_s2 + $0x10] sm:$0xff] }
  0x14   : > { %616 = vmatprep.subr.mxu0 %v257_v10  ;;  %v265_v28 = vld [vmem:[%s3329_s1 + $0x18] sm:$0xff]  ;;  %v294_v30 = vld [vmem:[%s3330_s2] sm:$0xff]  ;;  %v295_v32 = vld [vmem:[%s3330_s2 + $0x8] sm:$0xff] }
  0x15   : > { %617 = vmatpush1.msra.mxu0 %v256_v11  ;;  %378 = vperm.xlu1 %2665, %v304_v12   ;;  %v297_v29 = vld [vmem:[%s3330_s2 + $0x18] sm:$0xff]  ;;  %v266_v31 = vld [vmem:[%s3329_s1 + $0x20] sm:$0xff]  ;;  %v324_v33 = vld [vmem:[%s3330_s2 + $0xf0] sm:$0xff] }
  0x16   : > { %618 = vmatprep.subr.mxu0 %v255_v13  ;;  %383 = vperm.xlu0 %2664, %v305_v14   ;;  %v267_v34 = vld [vmem:[%s3329_s1 + $0x28] sm:$0xff]  ;;  %v325_v35 = vld [vmem:[%s3330_s2 + $0xf8] sm:$0xff]  ;;  %v322_v36 = vld [vmem:[%s3330_s2 + $0xe0] sm:$0xff] }
  0x17   : > { %619 = vmatpush1.msra.mxu0 %v254_v15  ;;  %v268_v37 = vld [vmem:[%s3329_s1 + $0x30] sm:$0xff]  ;;  %v323_v38 = vld [vmem:[%s3330_s2 + $0xe8] sm:$0xff]  ;;  %v269_v40 = vld [vmem:[%s3329_s1 + $0x38] sm:$0xff] }
  0x18   : > { %620 = vmatprep.subr.mxu0 %v253_v16  ;;  %v320_v39 = vld [vmem:[%s3330_s2 + $0xd0] sm:$0xff]  ;;  %v321_v41 = vld [vmem:[%s3330_s2 + $0xd8] sm:$0xff]  ;;  %v318_v42 = vld [vmem:[%s3330_s2 + $0xc0] sm:$0xff] }
  0x19   : > { %621 = vmatpush1.msra.mxu0 %v252_v17  ;;  %368 = vperm.xlu1 %2665, %v302_v18   ;;  %v270_v43 = vld [vmem:[%s3329_s1 + $0x40] sm:$0xff]  ;;  %v319_v44 = vld [vmem:[%s3330_s2 + $0xc8] sm:$0xff]  ;;  %v316_v45 = vld [vmem:[%s3330_s2 + $0xb0] sm:$0xff] }
  0x1a   : > { %2434 = vmatmul.mubr.msk.f32.vlgmr.msra.gmra.mxu0 %vm486_vm1, %v262_v19  ;;  %373 = vperm.xlu0 %2664, %v303_v20   ;;  %v271_v46 = vld [vmem:[%s3329_s1 + $0x48] sm:$0xff]  ;;  %v317_v47 = vld [vmem:[%s3330_s2 + $0xb8] sm:$0xff]  ;;  %v314_v48 = vld [vmem:[%s3330_s2 + $0xa0] sm:$0xff] }
  0x1b   : > { %660 = vmatprep.mubr.f32.mxu0 %v2674_v0  ;;  %v272_v49 = vld [vmem:[%s3329_s1 + $0x50] sm:$0xff]  ;;  %v315_v50 = vld [vmem:[%s3330_s2 + $0xa8] sm:$0xff]  ;;  %v273_v52 = vld [vmem:[%s3329_s1 + $0x58] sm:$0xff] }
  0x1c   : > { %v312_v51 = vld [vmem:[%s3330_s2 + $0x90] sm:$0xff]  ;;  %v313_v53 = vld [vmem:[%s3330_s2 + $0x98] sm:$0xff]  ;;  %v310_v54 = vld [vmem:[%s3330_s2 + $0x80] sm:$0xff] }
  0x1d   : > { %358 = vperm.xlu1 %2665, %v300_v21   ;;  %v274_v55 = vld [vmem:[%s3329_s1 + $0x60] sm:$0xff]  ;;  %v311_v56 = vld [vmem:[%s3330_s2 + $0x88] sm:$0xff]  ;;  %v276_v59 = vld [vmem:[%s3329_s1 + $0x70] sm:$0xff] }
  0x1e   : > { %2435 = vmatmul.mubr.msk.f32.gmra.mxu0 %vm486_vm1, %v263_v22  ;;  %363 = vperm.xlu0 %2664, %v301_v23   ;;  %v275_v57 = vld [vmem:[%s3329_s1 + $0x68] sm:$0xff]  ;;  %v913_v58 = vld [vmem:[%s3332_s4] sm:$0x1f]  ;;  %v277_v60 = vld [vmem:[%s3329_s1 + $0x78] sm:$0xff] }
  0x1f   : > { %666 = vmatprep.mubr.f32.mxu0 %v2674_v0  ;;  %v278_v61 = vld [vmem:[%s3329_s1 + $0x80] sm:$0xff]  ;;  %v279_v62 = vld [vmem:[%s3329_s1 + $0x88] sm:$0xff]  ;;  %v280_v63 = vld [vmem:[%s3329_s1 + $0x90] sm:$0xff] }
  0x20   : > { %v281_v1 = vld [vmem:[%s3329_s1 + $0x98] sm:$0xff]  ;;  %v282_v2 = vld [vmem:[%s3329_s1 + $0xa0] sm:$0xff]  ;;  %v283_v3 = vld [vmem:[%s3329_s1 + $0xa8] sm:$0xff] }
  0x21   : > { %348 = vperm.xlu1 %2665, %v298_v24   ;;  %v284_v4 = vld [vmem:[%s3329_s1 + $0xb0] sm:$0xff]  ;;  %v285_v5 = vld [vmem:[%s3329_s1 + $0xb8] sm:$0xff]  ;;  %v286_v6 = vld [vmem:[%s3329_s1 + $0xc0] sm:$0xff] }
  0x22   : > { %2436 = vmatmul.mubr.msk.f32.gmra.mxu0 %vm486_vm1, %v264_v25  ;;  %353 = vperm.xlu0 %2664, %v299_v26   ;;  %v287_v7 = vld [vmem:[%s3329_s1 + $0xc8] sm:$0xff]  ;;  %v288_v8 = vld [vmem:[%s3329_s1 + $0xd0] sm:$0xff]  ;;  %v289_v9 = vld [vmem:[%s3329_s1 + $0xd8] sm:$0xff] }
  0x23   : > { %672 = vmatprep.mubr.f32.mxu0 %v2674_v0  ;;  %v290_v10 = vld [vmem:[%s3329_s1 + $0xe0] sm:$0xff]  ;;  %v291_v11 = vld [vmem:[%s3329_s1 + $0xe8] sm:$0xff]  ;;  %v292_v12 = vld [vmem:[%s3329_s1 + $0xf0] sm:$0xff] }
  0x24   : > { %v293_v13 = vld [vmem:[%s3329_s1 + $0xf8] sm:$0xff] }
  0x25   : > { %338 = vperm.xlu1 %2665, %v296_v27  }
  0x26   : > { %2437 = vmatmul.mubr.msk.f32.gmra.mxu0 %vm486_vm1, %v265_v28  ;;  %343 = vperm.xlu0 %2664, %v297_v29  }
  0x27   : > { %678 = vmatprep.mubr.f32.mxu0 %v2674_v0 }
  0x29   : > { %328 = vperm.xlu1 %2665, %v294_v30  }
  0x2a   : > { %2438 = vmatmul.mubr.msk.f32.gmra.mxu0 %vm486_vm1, %v266_v31  ;;  %333 = vperm.xlu0 %2664, %v295_v32   ;;  %v912_v31 = vld [vmem:[%s3331_s3 + $0x8] sm:$0x1f] }
  0x2b   : > { %684 = vmatprep.mubr.f32.mxu0 %v2674_v0  ;;  %983 = vmatprep.mubr.f32.mxu1 %v912_v31 }
  0x2d   : > { %478 = vperm.xlu1 %2665, %v324_v33  }
  0x2e   : > { %2439 = vmatmul.mubr.msk.f32.gmra.mxu0 %vm486_vm1, %v267_v34  ;;  %483 = vperm.xlu0 %2664, %v325_v35  }
  0x2f   : > { %690 = vmatprep.mubr.f32.mxu0 %v2674_v0 }
  0x31   : > { %468 = vperm.xlu1 %2665, %v322_v36  }
  0x32   : > { %2440 = vmatmul.mubr.msk.f32.gmra.mxu0 %vm486_vm1, %v268_v37  ;;  %473 = vperm.xlu0 %2664, %v323_v38  }
  0x33   : > { %696 = vmatprep.mubr.f32.mxu0 %v2674_v0 }
  0x35   : > { %458 = vperm.xlu1 %2665, %v320_v39  }
  0x36   : > { %2441 = vmatmul.mubr.msk.f32.gmra.mxu0 %vm486_vm1, %v269_v40  ;;  %463 = vperm.xlu0 %2664, %v321_v41  }
  0x37   : > { %702 = vmatprep.mubr.f32.mxu0 %v2674_v0 }
  0x39   : > { %448 = vperm.xlu1 %2665, %v318_v42  }
  0x3a   : > { %2442 = vmatmul.mubr.msk.f32.gmra.mxu0 %vm486_vm1, %v270_v43  ;;  %453 = vperm.xlu0 %2664, %v319_v44  }
  0x3b   : > { %708 = vmatprep.mubr.f32.mxu0 %v2674_v0 }
  0x3d   : > { %438 = vperm.xlu1 %2665, %v316_v45  }
  0x3e   : > { %2443 = vmatmul.mubr.msk.f32.gmra.mxu0 %vm486_vm1, %v271_v46  ;;  %443 = vperm.xlu0 %2664, %v317_v47  }
  0x3f   : > { %714 = vmatprep.mubr.f32.mxu0 %v2674_v0 }
  0x41   : > { %428 = vperm.xlu1 %2665, %v314_v48  }
  0x42   : > { %2444 = vmatmul.mubr.msk.f32.gmra.mxu0 %vm486_vm1, %v272_v49  ;;  %433 = vperm.xlu0 %2664, %v315_v50  }
  0x43   : > { %720 = vmatprep.mubr.f32.mxu0 %v2674_v0 }
  0x45   : > { %418 = vperm.xlu1 %2665, %v312_v51  }
  0x46   : > { %2445 = vmatmul.mubr.msk.f32.gmra.mxu0 %vm486_vm1, %v273_v52  ;;  %423 = vperm.xlu0 %2664, %v313_v53  }
  0x47   : > { %726 = vmatprep.mubr.f32.mxu0 %v2674_v0 }
  0x49   : > { %408 = vperm.xlu1 %2665, %v310_v54  }
  0x4a   : > { %2446 = vmatmul.mubr.msk.f32.gmra.mxu0 %vm486_vm1, %v274_v55  ;;  %413 = vperm.xlu0 %2664, %v311_v56  }
  0x4b   : > { %732 = vmatprep.mubr.f32.mxu0 %v2674_v0 }
  0x4e   : > { %2447 = vmatmul.mubr.msk.f32.gmra.mxu0 %vm486_vm1, %v275_v57  ;;  %916 = vperm.xlu0 %2664, %v913_v58  }
  0x4f   : > { %738 = vmatprep.mubr.f32.mxu0 %v2674_v0 }
  0x52   : > { %2448 = vmatmul.mubr.msk.f32.gmra.mxu0 %vm486_vm1, %v276_v59 }
  0x53   : > { %744 = vmatprep.mubr.f32.mxu0 %v2674_v0 }
  0x56   : > { %2449 = vmatmul.mubr.msk.f32.gmra.mxu0 %vm486_vm1, %v277_v60 }
  0x57   : > { %750 = vmatprep.mubr.f32.mxu0 %v2674_v0 }
  0x5a   : > { %2450 = vmatmul.mubr.msk.f32.gmra.mxu0 %vm486_vm1, %v278_v61 }
  0x5b   : > { %756 = vmatprep.mubr.f32.mxu0 %v2674_v0 }
  0x5e   : > { %2451 = vmatmul.mubr.msk.f32.gmra.mxu0 %vm486_vm1, %v279_v62 }
  0x5f   : > { %762 = vmatprep.mubr.f32.mxu0 %v2674_v0 }
  0x62   : > { %2452 = vmatmul.mubr.msk.f32.gmra.mxu0 %vm486_vm1, %v280_v63 }
  0x63   : > { %768 = vmatprep.mubr.f32.mxu0 %v2674_v0 }
  0x66   : > { %2453 = vmatmul.mubr.msk.f32.gmra.mxu0 %vm486_vm1, %v281_v1 }
  0x67   : > { %774 = vmatprep.mubr.f32.mxu0 %v2674_v0 }
  0x6a   : > { %2454 = vmatmul.mubr.msk.f32.gmra.mxu0 %vm486_vm1, %v282_v2 }
  0x6b   : > { %780 = vmatprep.mubr.f32.mxu0 %v2674_v0 }
  0x6e   : > { %2455 = vmatmul.mubr.msk.f32.gmra.mxu0 %vm486_vm1, %v283_v3 }
  0x6f   : > { %786 = vmatprep.mubr.f32.mxu0 %v2674_v0 }
  0x72   : > { %2456 = vmatmul.mubr.msk.f32.gmra.mxu0 %vm486_vm1, %v284_v4 }
  0x73   : > { %792 = vmatprep.mubr.f32.mxu0 %v2674_v0 }
  0x76   : > { %2457 = vmatmul.mubr.msk.f32.gmra.mxu0 %vm486_vm1, %v285_v5 }
  0x77   : > { %798 = vmatprep.mubr.f32.mxu0 %v2674_v0 }
  0x7a   : > { %2458 = vmatmul.mubr.msk.f32.gmra.mxu0 %vm486_vm1, %v286_v6 }
  0x7b   : > { %804 = vmatprep.mubr.f32.mxu0 %v2674_v0 }
  0x7e   : > { %2459 = vmatmul.mubr.msk.f32.gmra.mxu0 %vm486_vm1, %v287_v7 }
  0x7f   : > { %810 = vmatprep.mubr.f32.mxu0 %v2674_v0 }
  0x82   : > { %2460 = vmatmul.mubr.msk.f32.gmra.mxu0 %vm486_vm1, %v288_v8 }
  0x83   : > { %816 = vmatprep.mubr.f32.mxu0 %v2674_v0 }
  0x86   : > { %2461 = vmatmul.mubr.msk.f32.gmra.mxu0 %vm486_vm1, %v289_v9 }
  0x87   : > { %822 = vmatprep.mubr.f32.mxu0 %v2674_v0 }
  0x88   : > { %v394_v40 = vpop.permute.xlu1 %393 }
  0x89   : > { %v404_v38 = vpop.permute.xlu0 %403 }
  0x8a   : > { %2462 = vmatmul.mubr.msk.f32.gmra.mxu0 %vm486_vm1, %v290_v10 }
  0x8b   : > { %828 = vmatprep.mubr.f32.mxu0 %v2674_v0 }
  0x8c   : > { %v389_v45 = vpop.permute.xlu1 %388 }
  0x8d   : > { %v399_v43 = vpop.permute.xlu0 %398 }
  0x8e   : > { %2463 = vmatmul.mubr.msk.f32.gmra.mxu0 %vm486_vm1, %v291_v11 }
  0x8f   : > { %834 = vmatprep.mubr.f32.mxu0 %v2674_v0 }
  0x90   : > { %v379_v50 = vpop.permute.xlu1 %378 }
  0x91   : > { %v384_v48 = vpop.permute.xlu0 %383 }
  0x92   : > { %2464 = vmatmul.mubr.msk.f32.gmra.mxu0 %vm486_vm1, %v292_v12 }
  0x93   : > { %840 = vmatprep.mubr.f32.mxu0 %v2674_v0 }
  0x94   : > { %v369_v59 = vpop.permute.xlu1 %368 }
  0x95   : > { %v374_v54 = vpop.permute.xlu0 %373 }
  0x96   : > { %2465 = vmatmul.mubr.msk.f32.gmra.mxu0 %vm486_vm1, %v293_v13 }
  0x98   : > { %v359_v13 = vpop.permute.xlu1 %358 }
  0x99   : > { %v364_v7 = vpop.permute.xlu0 %363 }
  0xda   : > { %v2992_v14 = vpop.f32.mrf.mxu0 }
  0xdc   : > { %v2994_v15 = vpop.f32.mrf.mxu0 }
  0xde   : > { %v2996_v16 = vpop.f32.mrf.mxu0 }
  0xe0   : > { %v2998_v17 = vpop.f32.mrf.mxu0 }
  0xe2   : > { %v3000_v18 = vpop.f32.mrf.mxu0 }
  0xe4   : > { %v3002_v19 = vpop.f32.mrf.mxu0 }
  0xe6   : > { %v3004_v20 = vpop.f32.mrf.mxu0 }
  0xe8   : > { %v3006_v21 = vpop.f32.mrf.mxu0 }
  0xea   : > { %v3008_v22 = vpop.f32.mrf.mxu0 }
  0xec   : > { %v3010_v23 = vpop.f32.mrf.mxu0 }
  0xee   : > { %v3012_v24 = vpop.f32.mrf.mxu0 }
  0xf0   : > { %v3014_v25 = vpop.f32.mrf.mxu0 }
  0xf2   : > { %v3016_v26 = vpop.f32.mrf.mxu0 }
  0xf4   : > { %v3018_v27 = vpop.f32.mrf.mxu0 }
  0xf6   : > { %v3020_v28 = vpop.f32.mrf.mxu0 }
  0xf8   : > { %v3022_v29 = vpop.f32.mrf.mxu0 }
  0xfa   : > { %v3024_v30 = vpop.f32.mrf.mxu0 }
  0xfc   : > { %v3029_v32 = vpop.f32.mrf.mxu0 }
  0xfe   : > { %v710_v33 = vpop.f32.mrf.mxu0 }
 0x100   : > { %v712_v34 = vpop.f32.mrf.mxu0 }
 0x102   : > { %v716_v35 = vpop.f32.mrf.mxu0 }
 0x104   : > { %v718_v36 = vpop.f32.mrf.mxu0 }
 0x105   : > { %v719_v31 = vadd.f32 %v718_v36, %v379_v50  ;;  %v705_v36 = vadd.f32 %v3024_v30, %v369_v59  ;;  %v693_v30 = vadd.f32 %v3016_v26, %v359_v13 }
 0x106   : > { %v722_v37 = vpop.f32.mrf.mxu0 }
 0x107   : > { %v723_v10 = vadd.f32 %v722_v37, %v384_v48  ;;  %v354_v37 = vpop.permute.xlu0 %353 }
 0x108   : > { %v724_v39 = vpop.f32.mrf.mxu0 }
 0x109   : > { %v725_v8 = vadd.f32 %v724_v39, %v384_v48  ;;  %v711_v39 = vadd.f32 %v710_v33, %v374_v54  ;;  %v868_v48 = vmax.f32 %v719_v31, 0.0  ;;  %v699_v33 = vadd.f32 %v3020_v28, %v364_v7 }
 0x10a   : > { %v728_v41 = vpop.f32.mrf.mxu0  ;;  %v687_v28 = vadd.f32 %v3012_v24, %v354_v37 }
 0x10b   : > { %v729_v4 = vadd.f32 %v728_v41, %v389_v45 }
 0x10c   : > { %v730_v42 = vpop.f32.mrf.mxu0 }
 0x10d   : > { %v731_v2 = vadd.f32 %v730_v42, %v389_v45  ;;  %v871_v42 = vmax.f32 %v729_v4, 0.0  ;;  %v869_v45 = vmax.f32 %v723_v10, 0.0 }
 0x10e   : > { %v734_v44 = vpop.f32.mrf.mxu0 }
 0x10f   : > { %v735_v62 = vadd.f32 %v734_v44, %v394_v40  ;;  %v870_v44 = vmax.f32 %v725_v8, 0.0 }
 0x110   : > { %v736_v46 = vpop.f32.mrf.mxu0 }
 0x111   : > { %v737_v60 = vadd.f32 %v736_v46, %v394_v40  ;;  %v873_v11 = vmax.f32 %v735_v62, 0.0  ;;  %v717_v40 = vadd.f32 %v716_v35, %v379_v50  ;;  %v349_v50 = vpop.permute.xlu1 %348 }
 0x112   : > { %v740_v47 = vpop.f32.mrf.mxu0  ;;  %v683_v62 = vadd.f32 %v3010_v23, %v349_v50  ;;  %v681_v26 = vadd.f32 %v3008_v22, %v349_v50 }
 0x113   : > { %v741_v57 = vadd.f32 %v740_v47, %v399_v43  ;;  %v874_v9 = vmax.f32 %v737_v60, 0.0  ;;  %v707_v47 = vadd.f32 %v3029_v32, %v369_v59  ;;  %v867_v35 = vmax.f32 %v717_v40, 0.0 }
 0x114   : > { %v742_v49 = vpop.f32.mrf.mxu0  ;;  %v695_v32 = vadd.f32 %v3018_v27, %v359_v13  ;;  %v861_v60 = vmax.f32 %v699_v33, 0.0  ;;  %v855_v10 = vmax.f32 %v681_v26, 0.0 }
 0x115   : > { %v743_v55 = vadd.f32 %v742_v49, %v399_v43  ;;  %v875_v5 = vmax.f32 %v741_v57, 0.0  ;;  %v713_v43 = vadd.f32 %v712_v34, %v374_v54  ;;  %v701_v34 = vadd.f32 %v3022_v29, %v364_v7  ;;  %v344_v57 = vpop.permute.xlu0 %343  ;;  %v339_v27 = vpop.permute.xlu1 %338 }
 0x116   : > { %v746_v51 = vpop.f32.mrf.mxu0  ;;  %v864_v54 = vmax.f32 %v707_v47, 0.0  ;;  %v689_v29 = vadd.f32 %v3014_v25, %v354_v37  ;;  %v677_v25 = vadd.f32 %v3006_v21, %v344_v57  ;;  %v675_v24 = vadd.f32 %v3004_v20, %v344_v57 }
 0x117   : > { %v747_v52 = vadd.f32 %v746_v51, %v404_v38  ;;  %v876_v3 = vmax.f32 %v743_v55, 0.0  ;;  %v866_v51 = vmax.f32 %v713_v43, 0.0  ;;  %v863_v55 = vmax.f32 %v705_v36, 0.0 }
 0x118   : > { %v748_v53 = vpop.f32.mrf.mxu0  ;;  %v862_v59 = vmax.f32 %v701_v34, 0.0  ;;  %v858_v4 = vmax.f32 %v689_v29, 0.0  ;;  %v671_v23 = vadd.f32 %v3002_v19, %v339_v27  ;;  %v669_v22 = vadd.f32 %v3000_v18, %v339_v27 }
 0x119   : > { %v749_v56 = vadd.f32 %v748_v53, %v404_v38  ;;  %v877_v63 = vmax.f32 %v747_v52, 0.0  ;;  %v872_v38 = vmax.f32 %v731_v2, 0.0  ;;  %v865_v52 = vmax.f32 %v711_v39, 0.0  ;;  %v334_v8 = vpop.permute.xlu0 %333  ;;  %v329_v21 = vpop.permute.xlu1 %328 }
 0x11a   : > { %v3031_v58 = vpop.f32.mrf.mxu0  ;;  %v859_v2 = vmax.f32 %v693_v30, 0.0  ;;  %v665_v13 = vadd.f32 %v2998_v17, %v334_v8  ;;  %v854_v31 = vmax.f32 %v677_v25, 0.0  ;;  %v663_v20 = vadd.f32 %v2996_v16, %v334_v8 }
 0x11b   : > { %v878_v61 = vmax.f32 %v749_v56, 0.0  ;;  %v659_v19 = vadd.f32 %v2994_v15, %v329_v21  ;;  %v657_v18 = vadd.f32 %v2992_v14, %v329_v21  ;;  %v851_v43 = vmax.f32 %v669_v22, 0.0 }
 0x11c   : > { %v3033_v1 = vpop.f32.mrf.mxu0  ;;  %v850_v39 = vmax.f32 %v665_v13, 0.0  ;;  %v849_v17 = vmax.f32 %v663_v20, 0.0 }
 0x11d   : > { %919 = vmatprep.subr.mxu1 %v878_v61  ;;  %v848_v16 = vmax.f32 %v659_v19, 0.0  ;;  %v847_v37 = vmax.f32 %v657_v18, 0.0  ;;  %v484_v34 = vpop.permute.xlu0 %483  ;;  %v479_v33 = vpop.permute.xlu1 %478 }
 0x11e   : > { %v3035_v6 = vpop.f32.mrf.mxu0  ;;  %920 = vmatpush1.msra.mxu1 %v877_v63  ;;  %v860_v63 = vmax.f32 %v695_v32, 0.0 }
 0x11f   : > { %921 = vmatprep.subr.mxu1 %v876_v3 }
 0x120   : > { %v3037_v12 = vpop.f32.mrf.mxu0  ;;  %922 = vmatpush1.msra.mxu1 %v875_v5  ;;  %v857_v5 = vmax.f32 %v687_v28, 0.0 }
 0x121   : > { %923 = vmatprep.subr.mxu1 %v874_v9  ;;  %v856_v9 = vmax.f32 %v683_v62, 0.0 }
 0x122   : > { %v3039_v41 = vpop.f32.mrf.mxu0  ;;  %924 = vmatpush1.msra.mxu1 %v873_v11 }
 0x123   : > { %925 = vmatprep.subr.mxu1 %v872_v38  ;;  %v853_v38 = vmax.f32 %v675_v24, 0.0 }
 0x124   : > { %v3041_v46 = vpop.f32.mrf.mxu0  ;;  %926 = vmatpush1.msra.mxu1 %v871_v42  ;;  %v852_v42 = vmax.f32 %v671_v23, 0.0 }
 0x125   : > { %927 = vmatprep.subr.mxu1 %v870_v44 }
 0x126   : > { %v3045_v49 = vpop.f32.mrf.mxu0  ;;  %928 = vmatpush1.msra.mxu1 %v869_v45 }
 0x127   : > { %929 = vmatprep.subr.mxu1 %v868_v48 }
 0x128   : > { %v3049_v53 = vpop.f32.mrf.mxu0  ;;  %930 = vmatpush1.msra.mxu1 %v867_v35 }
 0x129   : > { %931 = vmatprep.subr.mxu1 %v866_v51 }
 0x12a   : > { %v3053_v56 = vpop.f32.mrf.mxu0  ;;  %932 = vmatpush1.msra.mxu1 %v865_v52 }
 0x12b   : > { %933 = vmatprep.subr.mxu1 %v864_v54  ;;  %v474_v54 = vpop.permute.xlu0 %473 }
 0x12c   : > { %v3057_v61 = vpop.f32.mrf.mxu0  ;;  %934 = vmatpush1.msra.mxu1 %v863_v55  ;;  %v469_v55 = vpop.permute.xlu1 %468 }
 0x12d   : > { %935 = vmatprep.subr.mxu1 %v862_v59 }
 0x12e   : > { %v3061_v3 = vpop.f32.mrf.mxu0  ;;  %936 = vmatpush1.msra.mxu1 %v861_v60 }
 0x12f   : > { %937 = vmatprep.subr.mxu1 %v860_v63  ;;  %v464_v59 = vpop.permute.xlu0 %463 }
 0x130   : > { %v3065_v7 = vpop.f32.mrf.mxu0  ;;  %938 = vmatpush1.msra.mxu1 %v859_v2  ;;  %v459_v60 = vpop.permute.xlu1 %458 }
 0x131   : > { %939 = vmatprep.subr.mxu1 %v858_v4 }
 0x132   : > { %v3069_v11 = vpop.f32.mrf.mxu0  ;;  %940 = vmatpush1.msra.mxu1 %v857_v5 }
 0x133   : > { %941 = vmatprep.subr.mxu1 %v856_v9  ;;  %v454_v26 = vpop.permute.xlu0 %453 }
 0x134   : > { %v3073_v40 = vpop.f32.mrf.mxu0  ;;  %942 = vmatpush1.msra.mxu1 %v855_v10  ;;  %v449_v24 = vpop.permute.xlu1 %448 }
 0x135   : > { %943 = vmatprep.subr.mxu1 %v854_v31 }
 0x136   : > { %v3077_v44 = vpop.f32.mrf.mxu0  ;;  %944 = vmatpush1.msra.mxu1 %v853_v38 }
 0x137   : > { %945 = vmatprep.subr.mxu1 %v852_v42  ;;  %v444_v31 = vpop.permute.xlu0 %443 }
 0x138   : > { %v3079_v45 = vpop.f32.mrf.mxu0  ;;  %946 = vmatpush1.msra.mxu1 %v851_v43  ;;  %v439_v18 = vpop.permute.xlu1 %438 }
 0x139   : > { %947 = vmatprep.subr.mxu1 %v850_v39 }
 0x13a   : > { %v3081_v47 = vpop.f32.mrf.mxu0  ;;  %948 = vmatpush1.msra.mxu1 %v849_v17 }
 0x13b   : > { %949 = vmatprep.subr.mxu1 %v848_v16 }
 0x13c   : > { %v802_v15 = vpop.f32.mrf.mxu0  ;;  %950 = vmatpush1.msra.mxu1 %v847_v37 }
 0x13e   : > { %v806_v14 = vpop.f32.mrf.mxu0 }
 0x140   : > { %v808_v48 = vpop.f32.mrf.mxu0 }
 0x141   : > { %v809_v37 = vadd.f32 %v808_v48, %v454_v26  ;;  %v795_v48 = vadd.f32 %v3077_v44, %v444_v31 }
 0x142   : > { %v812_v36 = vpop.f32.mrf.mxu0 }
 0x143   : > { %v813_v17 = vadd.f32 %v812_v36, %v459_v60  ;;  %v898_v36 = vmax.f32 %v809_v37, 0.0 }
 0x144   : > { %v814_v35 = vpop.f32.mrf.mxu0 }
 0x145   : > { %v815_v43 = vadd.f32 %v814_v35, %v459_v60  ;;  %v429_v35 = vpop.permute.xlu1 %428 }
 0x146   : > { %v818_v50 = vpop.f32.mrf.mxu0 }
 0x147   : > { %v819_v19 = vadd.f32 %v818_v50, %v464_v59  ;;  %v801_v50 = vadd.f32 %v3081_v47, %v449_v24 }
 0x148   : > { %v820_v51 = vpop.f32.mrf.mxu0 }
 0x149   : > { %v821_v20 = vadd.f32 %v820_v51, %v464_v59  ;;  %v803_v51 = vadd.f32 %v802_v15, %v449_v24  ;;  %v789_v15 = vadd.f32 %v3069_v11, %v439_v18  ;;  %v895_v59 = vmax.f32 %v801_v50, 0.0  ;;  %v419_v44 = vpop.permute.xlu1 %418 }
 0x14a   : > { %v824_v52 = vpop.f32.mrf.mxu0 }
 0x14b   : > { %v825_v21 = vadd.f32 %v824_v52, %v469_v55  ;;  %v901_v52 = vmax.f32 %v819_v19, 0.0 }
 0x14c   : > { %v826_v32 = vpop.f32.mrf.mxu0 }
 0x14d   : > { %v827_v22 = vadd.f32 %v826_v32, %v469_v55  ;;  %v903_v16 = vmax.f32 %v825_v21, 0.0  ;;  %v434_v32 = vpop.permute.xlu0 %433  ;;  %v797_v55 = vadd.f32 %v3079_v45, %v444_v31 }
 0x14e   : > { %v830_v30 = vpop.f32.mrf.mxu0  ;;  %v783_v45 = vadd.f32 %v3061_v3, %v434_v32 }
 0x14f   : > { %v831_v23 = vadd.f32 %v830_v30, %v474_v54  ;;  %v904_v39 = vmax.f32 %v827_v22, 0.0  ;;  %v899_v30 = vmax.f32 %v813_v17, 0.0  ;;  %v894_v60 = vmax.f32 %v797_v55, 0.0 }
 0x150   : > { %v832_v57 = vpop.f32.mrf.mxu0 }
 0x151   : > { %v833_v5 = vadd.f32 %v832_v57, %v474_v54  ;;  %v905_v42 = vmax.f32 %v831_v23, 0.0  ;;  %v900_v54 = vmax.f32 %v815_v43, 0.0  ;;  %v424_v47 = vpop.permute.xlu0 %423 }
 0x152   : > { %v836_v29 = vpop.f32.mrf.mxu0  ;;  %v773_v11 = vadd.f32 %v3049_v53, %v424_v47 }
 0x153   : > { %v837_v4 = vadd.f32 %v836_v29, %v479_v33  ;;  %v906_v38 = vmax.f32 %v833_v5, 0.0  ;;  %v896_v29 = vmax.f32 %v803_v51, 0.0 }
 0x154   : > { %v838_v28 = vpop.f32.mrf.mxu0  ;;  %v886_v23 = vmax.f32 %v773_v11, 0.0 }
 0x155   : > { %v839_v2 = vadd.f32 %v838_v28, %v479_v33  ;;  %v907_v13 = vmax.f32 %v837_v4, 0.0  ;;  %v807_v33 = vadd.f32 %v806_v14, %v454_v26  ;;  %v791_v14 = vadd.f32 %v3073_v40, %v439_v18  ;;  %v414_v3 = vpop.permute.xlu0 %413 }
 0x156   : > { %v842_v27 = vpop.f32.mrf.mxu0  ;;  %v785_v28 = vadd.f32 %v3065_v7, %v434_v32  ;;  %v777_v40 = vadd.f32 %v3053_v56, %v429_v35  ;;  %v891_v26 = vmax.f32 %v789_v15, 0.0  ;;  %v771_v7 = vadd.f32 %v3045_v49, %v424_v47  ;;  %v409_v56 = vpop.permute.xlu1 %408 }
 0x157   : > { %v843_v62 = vadd.f32 %v842_v27, %v484_v34  ;;  %v908_v10 = vmax.f32 %v839_v2, 0.0  ;;  %v897_v57 = vmax.f32 %v807_v33, 0.0  ;;  %v893_v27 = vmax.f32 %v795_v48, 0.0 }
 0x158   : > { %v844_v63 = vpop.f32.mrf.mxu0  ;;  %v890_v2 = vmax.f32 %v785_v28, 0.0  ;;  %v767_v4 = vadd.f32 %v3041_v46, %v419_v44  ;;  %v887_v5 = vmax.f32 %v777_v40, 0.0  ;;  %v759_v53 = vadd.f32 %v3035_v6, %v414_v3  ;;  %v911_v6 = vld [vmem:[%s3331_s3] sm:$0x1f] }
 0x159   : > { %v845_v25 = vadd.f32 %v844_v63, %v484_v34  ;;  %v909_v9 = vmax.f32 %v843_v62, 0.0  ;;  %v902_v34 = vmax.f32 %v821_v20, 0.0  ;;  %v779_v62 = vadd.f32 %v3057_v61, %v429_v35  ;;  %v917_v31 = vpop.permute.xlu0 %916 }
 0x15a   : > { %v892_v63 = vmax.f32 %v791_v14, 0.0  ;;  %v765_v61 = vadd.f32 %v3039_v41, %v419_v44  ;;  %v755_v49 = vadd.f32 %v3033_v1, %v409_v56  ;;  %v884_v22 = vmax.f32 %v767_v4, 0.0  ;;  %v3114_v1 = vld [vmem:[%s3333_s5] sm:$0xff] }
 0x15b   : > { %v910_v8 = vmax.f32 %v845_v25, 0.0  ;;  %v889_v25 = vmax.f32 %v783_v45, 0.0  ;;  %v888_v24 = vmax.f32 %v779_v62, 0.0  ;;  %v753_v46 = vadd.f32 %v3031_v58, %v409_v56  ;;  %v3107_v58 = vld [vmem:[%s3333_s5 + $0x8] sm:$0xff] }
 0x15c   : > { %v881_v21 = vmax.f32 %v759_v53, 0.0 }
 0x15d   : > { %951 = vmatprep.subr.mxu1 %v910_v8  ;;  %v761_v8 = vadd.f32 %v3037_v12, %v414_v3  ;;  %v879_v12 = vmax.f32 %v753_v46, 0.0 }
 0x15e   : > { %952 = vmatpush2.msra.mxu1 %v909_v9  ;;  %v885_v9 = vmax.f32 %v771_v7, 0.0 }
 0x15f   : > { %953 = vmatprep.subr.mxu1 %v908_v10  ;;  %v883_v10 = vmax.f32 %v765_v61, 0.0  ;;  %v882_v41 = vmax.f32 %v761_v8, 0.0 }
 0x160   : > { %954 = vmatpush2.msra.mxu1 %v907_v13  ;;  %v880_v13 = vmax.f32 %v755_v49, 0.0 }
 0x161   : > { %955 = vmatprep.subr.mxu1 %v906_v38 }
 0x162   : > { %956 = vmatpush2.msra.mxu1 %v905_v42 }
 0x163   : > { %957 = vmatprep.subr.mxu1 %v904_v39 }
 0x164   : > { %958 = vmatpush2.msra.mxu1 %v903_v16 }
 0x165   : > { %959 = vmatprep.subr.mxu1 %v902_v34 }
 0x166   : > { %960 = vmatpush2.msra.mxu1 %v901_v52 }
 0x167   : > { %961 = vmatprep.subr.mxu1 %v900_v54 }
 0x168   : > { %962 = vmatpush2.msra.mxu1 %v899_v30 }
 0x169   : > { %963 = vmatprep.subr.mxu1 %v898_v36 }
 0x16a   : > { %964 = vmatpush2.msra.mxu1 %v897_v57 }
 0x16b   : > { %965 = vmatprep.subr.mxu1 %v896_v29 }
 0x16c   : > { %966 = vmatpush2.msra.mxu1 %v895_v59 }
 0x16d   : > { %967 = vmatprep.subr.mxu1 %v894_v60 }
 0x16e   : > { %968 = vmatpush2.msra.mxu1 %v893_v27 }
 0x16f   : > { %969 = vmatprep.subr.mxu1 %v892_v63 }
 0x170   : > { %970 = vmatpush2.msra.mxu1 %v891_v26 }
 0x171   : > { %971 = vmatprep.subr.mxu1 %v890_v2 }
 0x172   : > { %972 = vmatpush2.msra.mxu1 %v889_v25 }
 0x173   : > { %973 = vmatprep.subr.mxu1 %v888_v24 }
 0x174   : > { %974 = vmatpush2.msra.mxu1 %v887_v5 }
 0x175   : > { %975 = vmatprep.subr.mxu1 %v886_v23 }
 0x176   : > { %976 = vmatpush2.msra.mxu1 %v885_v9 }
 0x177   : > { %977 = vmatprep.subr.mxu1 %v884_v22 }
 0x178   : > { %978 = vmatpush2.msra.mxu1 %v883_v10 }
 0x179   : > { %979 = vmatprep.subr.mxu1 %v882_v41 }
 0x17a   : > { %980 = vmatpush2.msra.mxu1 %v881_v21 }
 0x17b   : > { %981 = vmatprep.subr.mxu1 %v880_v13 }
 0x17c   : > { %982 = vmatpush2.msra.mxu1 %v879_v12 }
 0x17d   : > { %984 = vmatmul.mubr.f32.vlgmr.msra.gmra.mxu1 %v911_v6  ;;  %2533 = vmatprep.subr.mxu1 %v2674_v0 }
 0x17e   : > { %2534 = vmatpush3.msra.mxu1 %v3107_v58  ;;  %2537 = vmatprep.mubr.msk.f32.mxu1 %vm2676_vm2, %v2674_v0 }
 0x17f   : > { %2535 = vmatprep.subr.mxu1 %v2674_v0 }
 0x180   : > { %2536 = vmatpush3.msra.mxu1 %v3114_v1 }
 0x181   : > { %2540 = vmatprep.subr.mxu1 %v2674_v0 }
 0x23d   : > { %v985_v20 = vpop.f32.mrf.mxu1 }
 0x23e   : > { %v986_v38 = vadd.f32 %v985_v20, %v917_v31 }
 0x23f   : > { %v987_v19 = vpop.f32.mrf.mxu1 }
 0x240   : > { %1140 = vrot.lane.b32.xlu0 %v986_v38, %s2677_s9  ;;  %1066 = vrot.lane.b32.xlu1 %v986_v38, %s2678_s10  ;;  %v988_v42 = vadd.f32 %v987_v19, %v917_v31 }
 0x241   : > { %2538 = vmatmul.mubr.msk.f32.vlgmr.msra.gmra.mxu1 %vm992_vm3, %v986_v38 }
 0x242   : > { %2541 = vmatpush3.msra.mxu1 %v3107_v58  ;;  %2544 = vmatprep.mubr.msk.f32.mxu1 %vm2676_vm2, %v2674_v0 }
 0x243   : > { %2542 = vmatprep.subr.mxu1 %v2674_v0 }
 0x244   : > { %1288 = vrot.lane.b32.xlu0 %v986_v38, %s2679_s11  ;;  %1214 = vrot.lane.b32.xlu1 %v986_v38, %s2680_s12 }
 0x245   : > { %2543 = vmatpush3.msra.mxu1 %v3114_v1 }
 0x246   : > { %2547 = vmatprep.subr.mxu1 %v2674_v0 }
 0x248   : > { %1436 = vrot.lane.b32.xlu0 %v986_v38, %s2681_s13  ;;  %1362 = vrot.lane.b32.xlu1 %v986_v38, %s2682_s14 }
 0x24c   : > { %1657 = vrot.lane.b32.xlu0 %v988_v42, %s2678_s10  ;;  %1510 = vrot.lane.b32.xlu1 %v986_v38, %s2683_s15 }
 0x250   : > { %1805 = vrot.lane.b32.xlu0 %v988_v42, %s2680_s12  ;;  %1731 = vrot.lane.b32.xlu1 %v988_v42, %s2677_s9 }
 0x254   : > { %1953 = vrot.lane.b32.xlu0 %v988_v42, %s2682_s14  ;;  %1879 = vrot.lane.b32.xlu1 %v988_v42, %s2679_s11 }
 0x258   : > { %2101 = vrot.lane.b32.xlu0 %v988_v42, %s2683_s15  ;;  %2027 = vrot.lane.b32.xlu1 %v988_v42, %s2681_s13 }
 0x2b2   : > { %v1067_v18 = vpop.permute.xlu1 %1066  ;;  %v1141_v43 = vpop.permute.xlu0 %1140 }
 0x2b3   : > { %2545 = vmatmul.mubr.msk.f32.vlgmr.msra.gmra.mxu1 %vm992_vm3, %v1067_v18 }
 0x2b4   : > { %2548 = vmatpush3.msra.mxu1 %v3107_v58  ;;  %2551 = vmatprep.mubr.msk.f32.mxu1 %vm2676_vm2, %v2674_v0 }
 0x2b5   : > { %2549 = vmatprep.subr.mxu1 %v2674_v0 }
 0x2b6   : > { %2550 = vmatpush3.msra.mxu1 %v3114_v1  ;;  %v1215_v39 = vpop.permute.xlu1 %1214  ;;  %v1289_v17 = vpop.permute.xlu0 %1288 }
 0x2b7   : > { %2554 = vmatprep.subr.mxu1 %v2674_v0  ;;  %2552 = vmatmul.mubr.msk.f32.vlgmr.msra.gmra.mxu1 %vm992_vm3, %v1141_v43 }
 0x2b8   : > { %2555 = vmatpush3.msra.mxu1 %v3107_v58  ;;  %2558 = vmatprep.mubr.msk.f32.mxu1 %vm2676_vm2, %v2674_v0 }
 0x2b9   : > { %2556 = vmatprep.subr.mxu1 %v2674_v0 }
 0x2ba   : > { %2557 = vmatpush3.msra.mxu1 %v3114_v1  ;;  %v1363_v16 = vpop.permute.xlu1 %1362  ;;  %v1437_v37 = vpop.permute.xlu0 %1436 }
 0x2bb   : > { %2561 = vmatprep.subr.mxu1 %v2674_v0  ;;  %2559 = vmatmul.mubr.msk.f32.vlgmr.msra.gmra.mxu1 %vm992_vm3, %v1215_v39 }
 0x2bc   : > { %2562 = vmatpush3.msra.mxu1 %v3107_v58  ;;  %2565 = vmatprep.mubr.msk.f32.mxu1 %vm2676_vm2, %v2674_v0 }
 0x2bd   : > { %2563 = vmatprep.subr.mxu1 %v2674_v0 }
 0x2be   : > { %2564 = vmatpush3.msra.mxu1 %v3114_v1  ;;  %v1511_v34 = vpop.permute.xlu1 %1510  ;;  %v1658_v33 = vpop.permute.xlu0 %1657 }
 0x2bf   : > { %2568 = vmatprep.subr.mxu1 %v2674_v0  ;;  %2566 = vmatmul.mubr.msk.f32.vlgmr.msra.gmra.mxu1 %vm992_vm3, %v1289_v17 }
 0x2c0   : > { %2569 = vmatpush3.msra.mxu1 %v3107_v58  ;;  %2572 = vmatprep.mubr.msk.f32.mxu1 %vm2676_vm2, %v2674_v0 }
 0x2c1   : > { %2570 = vmatprep.subr.mxu1 %v2674_v0 }
 0x2c2   : > { %2571 = vmatpush3.msra.mxu1 %v3114_v1  ;;  %v1732_v52 = vpop.permute.xlu1 %1731  ;;  %v1806_v32 = vpop.permute.xlu0 %1805 }
 0x2c3   : > { %2575 = vmatprep.subr.mxu1 %v2674_v0  ;;  %2573 = vmatmul.mubr.msk.f32.vlgmr.msra.gmra.mxu1 %vm992_vm3, %v1363_v16 }
 0x2c4   : > { %2576 = vmatpush3.msra.mxu1 %v3107_v58  ;;  %2579 = vmatprep.mubr.msk.f32.mxu1 %vm2676_vm2, %v2674_v0 }
 0x2c5   : > { %2577 = vmatprep.subr.mxu1 %v2674_v0 }
 0x2c6   : > { %2578 = vmatpush3.msra.mxu1 %v3114_v1  ;;  %v1880_v51 = vpop.permute.xlu1 %1879  ;;  %v1954_v54 = vpop.permute.xlu0 %1953 }
 0x2c7   : > { %2582 = vmatprep.subr.mxu1 %v2674_v0  ;;  %2580 = vmatmul.mubr.msk.f32.vlgmr.msra.gmra.mxu1 %vm992_vm3, %v1437_v37 }
 0x2c8   : > { %2583 = vmatpush3.msra.mxu1 %v3107_v58  ;;  %2586 = vmatprep.mubr.msk.f32.mxu1 %vm2676_vm2, %v2674_v0 }
 0x2c9   : > { %2584 = vmatprep.subr.mxu1 %v2674_v0 }
 0x2ca   : > { %2585 = vmatpush3.msra.mxu1 %v3114_v1  ;;  %v2028_v50 = vpop.permute.xlu1 %2027  ;;  %v2102_v30 = vpop.permute.xlu0 %2101 }
 0x2cb   : > { %2589 = vmatprep.subr.mxu1 %v2674_v0  ;;  %2587 = vmatmul.mubr.msk.f32.vlgmr.msra.gmra.mxu1 %vm992_vm3, %v1511_v34 }
 0x2cc   : > { %2590 = vmatpush3.msra.mxu1 %v3107_v58  ;;  %2593 = vmatprep.mubr.msk.f32.mxu1 %vm2676_vm2, %v2674_v0 }
 0x2cd   : > { %2591 = vmatprep.subr.mxu1 %v2674_v0 }
 0x2ce   : > { %2592 = vmatpush3.msra.mxu1 %v3114_v1 }
 0x2cf   : > { %2596 = vmatprep.subr.mxu1 %v2674_v0  ;;  %2594 = vmatmul.mubr.msk.f32.vlgmr.msra.gmra.mxu1 %vm992_vm3, %v988_v42 }
 0x2d0   : > { %2597 = vmatpush3.msra.mxu1 %v3107_v58  ;;  %2600 = vmatprep.mubr.msk.f32.mxu1 %vm2676_vm2, %v2674_v0 }
 0x2d1   : > { %2598 = vmatprep.subr.mxu1 %v2674_v0 }
 0x2d2   : > { %2599 = vmatpush3.msra.mxu1 %v3114_v1 }
 0x2d3   : > { %2603 = vmatprep.subr.mxu1 %v2674_v0  ;;  %2601 = vmatmul.mubr.msk.f32.vlgmr.msra.gmra.mxu1 %vm992_vm3, %v1658_v33 }
 0x2d4   : > { %2604 = vmatpush3.msra.mxu1 %v3107_v58  ;;  %2607 = vmatprep.mubr.msk.f32.mxu1 %vm2676_vm2, %v2674_v0 }
 0x2d5   : > { %2605 = vmatprep.subr.mxu1 %v2674_v0 }
 0x2d6   : > { %2606 = vmatpush3.msra.mxu1 %v3114_v1 }
 0x2d7   : > { %2610 = vmatprep.subr.mxu1 %v2674_v0  ;;  %2608 = vmatmul.mubr.msk.f32.vlgmr.msra.gmra.mxu1 %vm992_vm3, %v1732_v52 }
 0x2d8   : > { %2611 = vmatpush3.msra.mxu1 %v3107_v58  ;;  %2614 = vmatprep.mubr.msk.f32.mxu1 %vm2676_vm2, %v2674_v0 }
 0x2d9   : > { %2612 = vmatprep.subr.mxu1 %v2674_v0 }
 0x2da   : > { %2613 = vmatpush3.msra.mxu1 %v3114_v1 }
 0x2db   : > { %2617 = vmatprep.subr.mxu1 %v2674_v0  ;;  %2615 = vmatmul.mubr.msk.f32.vlgmr.msra.gmra.mxu1 %vm992_vm3, %v1806_v32 }
 0x2dc   : > { %2618 = vmatpush3.msra.mxu1 %v3107_v58  ;;  %2621 = vmatprep.mubr.msk.f32.mxu1 %vm2676_vm2, %v2674_v0 }
 0x2dd   : > { %2619 = vmatprep.subr.mxu1 %v2674_v0 }
 0x2de   : > { %2620 = vmatpush3.msra.mxu1 %v3114_v1 }
 0x2df   : > { %2624 = vmatprep.subr.mxu1 %v2674_v0  ;;  %2622 = vmatmul.mubr.msk.f32.vlgmr.msra.gmra.mxu1 %vm992_vm3, %v1880_v51 }
 0x2e0   : > { %2625 = vmatpush3.msra.mxu1 %v3107_v58  ;;  %2628 = vmatprep.mubr.msk.f32.mxu1 %vm2676_vm2, %v2674_v0 }
 0x2e1   : > { %2626 = vmatprep.subr.mxu1 %v2674_v0 }
 0x2e2   : > { %2627 = vmatpush3.msra.mxu1 %v3114_v1 }
 0x2e3   : > { %2631 = vmatprep.subr.mxu1 %v2674_v0  ;;  %2629 = vmatmul.mubr.msk.f32.vlgmr.msra.gmra.mxu1 %vm992_vm3, %v1954_v54 }
 0x2e4   : > { %2632 = vmatpush3.msra.mxu1 %v3107_v58  ;;  %2635 = vmatprep.mubr.msk.f32.mxu1 %vm2676_vm2, %v2674_v0 }
 0x2e5   : > { %2633 = vmatprep.subr.mxu1 %v2674_v0 }
 0x2e6   : > { %2634 = vmatpush3.msra.mxu1 %v3114_v1 }
 0x2e7   : > { %2638 = vmatprep.subr.mxu1 %v2674_v0  ;;  %2636 = vmatmul.mubr.msk.f32.vlgmr.msra.gmra.mxu1 %vm992_vm3, %v2028_v50 }
 0x2e8   : > { %2639 = vmatpush3.msra.mxu1 %v3107_v58  ;;  %2642 = vmatprep.mubr.msk.f32.mxu1 %vm2676_vm2, %v2674_v0 }
 0x2e9   : > { %2640 = vmatprep.subr.mxu1 %v2674_v0 }
 0x2ea   : > { %2641 = vmatpush3.msra.mxu1 %v3114_v1 }
 0x2eb   : > { %2643 = vmatmul.mubr.msk.f32.vlgmr.msra.gmra.mxu1 %vm992_vm3, %v2102_v30 }
 0x301   : > { %v1062_v35 = vpop.f32.mrf.mxu1 }
 0x302   : > { %2176 = vst.msk [vmem:[%s3235_s19] sm:$0x1f] %vm2175_vm4, %v1062_v35  ;;  %v2177_v0 = vmul.f32 0.75, %v1062_v35  ;;  %v2186_v59 = vmul.f32 0.25, %v1062_v35 }
 0x303   : > { %v2539_v55 = vpop.f32.mrf.mxu1 }
 0x373   : > { %v1136_v36 = vpop.f32.mrf.mxu1 }
 0x374   : > { %v2178_v48 = vmul.f32 0.25, %v1136_v36  ;;  %v2187_v29 = vmul.f32 0.75, %v1136_v36 }
 0x375   : > { %v2546_v57 = vpop.f32.mrf.mxu1 }
 0x376   : > { %v2179_v14 = vadd.f32 %v2178_v48, %v2177_v0  ;;  %v2188_v60 = vadd.f32 %v2187_v29, %v2186_v59 }
 0x377   : > { %v1210_v15 = vpop.f32.mrf.mxu1 }
 0x378   : > { %v2203_v47 = vmul.f32 0.75, %v1210_v15  ;;  %2181 = vrot.lane.b32.xlu1 %v2179_v14, %s2681_s13  ;;  %v2195_v45 = vmul.f32 0.25, %v1210_v15 }
 0x379   : > { %v2553_v28 = vpop.f32.mrf.mxu1 }
 0x37a   : > { %v2204_v27 = vadd.f32 %v2203_v47, %v2178_v48  ;;  %v2196_v40 = vadd.f32 %v2195_v45, %v2187_v29 }
 0x37b   : > { %v1284_v44 = vpop.f32.mrf.mxu1 }
 0x37c   : > { %2205 = vst.msk [vmem:[%s3235_s19 + $0x8] sm:$0x1f] %vm2175_vm4, %v2204_v27  ;;  %v2206_v62 = vmul.f32 0.25, %v1284_v44  ;;  %2190 = vrot.lane.b32.xlu1 %v2188_v60, %s2679_s11  ;;  %v2213_v11 = vmul.f32 0.75, %v1284_v44 }
 0x37d   : > { %v2560_v63 = vpop.f32.mrf.mxu1 }
 0x37e   : > { %v2207_v26 = vadd.f32 %v2206_v62, %v2203_v47  ;;  %v2214_v3 = vadd.f32 %v2213_v11, %v2195_v45 }
 0x37f   : > { %v1358_v2 = vpop.f32.mrf.mxu1 }
 0x380   : > { %v2227_v7 = vmul.f32 0.75, %v1358_v2  ;;  %2198 = vrot.lane.b32.xlu1 %v2196_v40, %s2677_s9  ;;  %2209 = vrot.lane.b32.xlu0 %v2207_v26, %s2681_s13  ;;  %v2220_v4 = vmul.f32 0.25, %v1358_v2 }
 0x381   : > { %v2567_v25 = vpop.f32.mrf.mxu1 }
 0x382   : > { %v2228_v24 = vadd.f32 %v2227_v7, %v2206_v62  ;;  %v2221_v8 = vadd.f32 %v2220_v4, %v2213_v11 }
 0x383   : > { %v1432_v61 = vpop.f32.mrf.mxu1 }
 0x384   : > { %2229 = vst.msk [vmem:[%s3235_s19 + $0x10] sm:$0x1f] %vm2175_vm4, %v2228_v24  ;;  %v2230_v5 = vmul.f32 0.25, %v1432_v61  ;;  %2216 = vrot.lane.b32.xlu0 %v2214_v3, %s2679_s11  ;;  %v2237_v53 = vmul.f32 0.75, %v1432_v61 }
 0x385   : > { %v2574_v56 = vpop.f32.mrf.mxu1 }
 0x386   : > { %v2231_v23 = vadd.f32 %v2230_v5, %v2227_v7  ;;  %v2238_v46 = vadd.f32 %v2237_v53, %v2220_v4 }
 0x387   : > { %v1506_v9 = vpop.f32.mrf.mxu1 }
 0x388   : > { %v2251_v49 = vmul.f32 0.75, %v1506_v9  ;;  %2223 = vrot.lane.b32.xlu0 %v2221_v8, %s2677_s9  ;;  %2233 = vrot.lane.b32.xlu1 %v2231_v23, %s2681_s13  ;;  %v2244_v10 = vmul.f32 0.25, %v1506_v9 }
 0x389   : > { %v2581_v22 = vpop.f32.mrf.mxu1 }
 0x38a   : > { %v2252_v41 = vadd.f32 %v2251_v49, %v2230_v5  ;;  %v2245_v6 = vadd.f32 %v2244_v10, %v2237_v53 }
 0x38b   : > { %v1580_v21 = vpop.f32.mrf.mxu1 }
 0x38c   : > { %2253 = vst.msk [vmem:[%s3235_s19 + $0x18] sm:$0x1f] %vm2175_vm4, %v2252_v41  ;;  %v2254_v13 = vmul.f32 0.25, %v1580_v21  ;;  %2240 = vrot.lane.b32.xlu1 %v2238_v46, %s2679_s11  ;;  %v2261_v1 = vmul.f32 0.75, %v1580_v21 }
 0x38d   : > { %v2588_v12 = vpop.f32.mrf.mxu1 }
 0x38e   : > { %v2255_v58 = vadd.f32 %v2254_v13, %v2251_v49  ;;  %v2262_v19 = vadd.f32 %v2261_v1, %v2244_v10 }
 0x38f   : > { %v1653_v31 = vpop.f32.mrf.mxu1 }
 0x390   : > { %v2275_v20 = vmul.f32 0.75, %v1653_v31  ;;  %2247 = vrot.lane.b32.xlu1 %v2245_v6, %s2677_s9  ;;  %2257 = vrot.lane.b32.xlu0 %v2255_v58, %s2681_s13  ;;  %v2268_v42 = vmul.f32 0.25, %v1653_v31 }
 0x391   : > { %v2595_v38 = vpop.f32.mrf.mxu1 }
 0x392   : > { %v2276_v18 = vadd.f32 %v2275_v20, %v2254_v13  ;;  %v2269_v16 = vadd.f32 %v2268_v42, %v2261_v1 }
 0x393   : > { %v1727_v43 = vpop.f32.mrf.mxu1 }
 0x394   : > { %2277 = vst.msk [vmem:[%s3235_s19 + $0x20] sm:$0x1f] %vm2175_vm4, %v2276_v18  ;;  %v2278_v39 = vmul.f32 0.25, %v1727_v43  ;;  %2264 = vrot.lane.b32.xlu0 %v2262_v19, %s2679_s11  ;;  %v2285_v34 = vmul.f32 0.75, %v1727_v43 }
 0x395   : > { %v2602_v17 = vpop.f32.mrf.mxu1 }
 0x396   : > { %v2279_v37 = vadd.f32 %v2278_v39, %v2275_v20  ;;  %v2286_v51 = vadd.f32 %v2285_v34, %v2268_v42 }
 0x397   : > { %v1801_v33 = vpop.f32.mrf.mxu1 }
 0x398   : > { %v2299_v52 = vmul.f32 0.75, %v1801_v33  ;;  %2271 = vrot.lane.b32.xlu0 %v2269_v16, %s2677_s9  ;;  %2281 = vrot.lane.b32.xlu1 %v2279_v37, %s2681_s13  ;;  %v2292_v54 = vmul.f32 0.25, %v1801_v33 }
 0x399   : > { %v2609_v32 = vpop.f32.mrf.mxu1 }
 0x39a   : > { %v2300_v50 = vadd.f32 %v2299_v52, %v2278_v39  ;;  %v2293_v36 = vadd.f32 %v2292_v54, %v2285_v34 }
 0x39b   : > { %v1875_v30 = vpop.f32.mrf.mxu1 }
 0x39c   : > { %2301 = vst.msk [vmem:[%s3235_s19 + $0x28] sm:$0x1f] %vm2175_vm4, %v2300_v50  ;;  %v2302_v35 = vmul.f32 0.25, %v1875_v30  ;;  %2288 = vrot.lane.b32.xlu1 %v2286_v51, %s2679_s11  ;;  %v2309_v48 = vmul.f32 0.75, %v1875_v30 }
 0x39d   : > { %v2616_v55 = vpop.f32.mrf.mxu1 }
 0x39e   : > { %v2303_v0 = vadd.f32 %v2302_v35, %v2299_v52  ;;  %v2310_v15 = vadd.f32 %v2309_v48, %v2292_v54 }
 0x39f   : > { %v1949_v57 = vpop.f32.mrf.mxu1 }
 0x3a0   : > { %v2323_v14 = vmul.f32 0.75, %v1949_v57  ;;  %2295 = vrot.lane.b32.xlu1 %v2293_v36, %s2677_s9  ;;  %2305 = vrot.lane.b32.xlu0 %v2303_v0, %s2681_s13  ;;  %v2316_v59 = vmul.f32 0.25, %v1949_v57 }
 0x3a1   : > { %v2623_v29 = vpop.f32.mrf.mxu1 }
 0x3a2   : > { %v2324_v47 = vadd.f32 %v2323_v14, %v2302_v35  ;;  %v2317_v27 = vadd.f32 %v2316_v59, %v2309_v48 }
 0x3a3   : > { %v2023_v28 = vpop.f32.mrf.mxu1 }
 0x3a4   : > { %2325 = vst.msk [vmem:[%s3235_s19 + $0x30] sm:$0x1f] %vm2175_vm4, %v2324_v47  ;;  %v2326_v60 = vmul.f32 0.25, %v2023_v28  ;;  %2312 = vrot.lane.b32.xlu0 %v2310_v15, %s2679_s11  ;;  %v2333_v62 = vmul.f32 0.75, %v2023_v28 }
 0x3a5   : > { %v2630_v45 = vpop.f32.mrf.mxu1 }
 0x3a6   : > { %v2327_v44 = vadd.f32 %v2326_v60, %v2323_v14  ;;  %v2334_v11 = vadd.f32 %v2333_v62, %v2316_v59 }
 0x3a7   : > { %v2097_v63 = vpop.f32.mrf.mxu1 }
 0x3a8   : > { %v2347_v40 = vmul.f32 0.75, %v2097_v63  ;;  %2319 = vrot.lane.b32.xlu0 %v2317_v27, %s2677_s9  ;;  %2329 = vrot.lane.b32.xlu1 %v2327_v44, %s2681_s13  ;;  %v2340_v2 = vmul.f32 0.25, %v2097_v63 }
 0x3a9   : > { %v2637_v26 = vpop.f32.mrf.mxu1 }
 0x3aa   : > { %v2348_v7 = vadd.f32 %v2347_v40, %v2326_v60  ;;  %v2341_v24 = vadd.f32 %v2340_v2, %v2333_v62 }
 0x3ab   : > { %v2171_v25 = vpop.f32.mrf.mxu1 }
 0x3ac   : > { %2349 = vst.msk [vmem:[%s3235_s19 + $0x38] sm:$0x1f] %vm2175_vm4, %v2348_v7  ;;  %v2350_v3 = vmul.f32 0.25, %v2171_v25  ;;  %2336 = vrot.lane.b32.xlu1 %v2334_v11, %s2679_s11  ;;  %v2357_v61 = vmul.f32 0.75, %v2171_v25 }
 0x3ad   : > { %v2644_v4 = vpop.f32.mrf.mxu1 }
 0x3ae   : > { %v2351_v5 = vadd.f32 %v2350_v3, %v2347_v40  ;;  %v2358_v56 = vadd.f32 %v2357_v61, %v2340_v2 }
 0x3b0   : > { %2343 = vrot.lane.b32.xlu1 %v2341_v24, %s2677_s9  ;;  %2353 = vrot.lane.b32.xlu0 %v2351_v5, %s2681_s13 }
 0x3b4   : > { %2360 = vrot.lane.b32.xlu0 %v2358_v56, %s2679_s11 }
 0x3b8   : > { %2365 = vrot.lane.b32.xlu0 %v2171_v25, %s2677_s9 }
 0x3ea   : > { %v2182_v8 = vpop.permute.xlu1 %2181 }
 0x3eb   : > { %2185 = vst.msk [vmem:[%s3235_s19] sm:$0x1f] %vm2184_vm5, %v2182_v8 }
 0x3ee   : > { %v2191_v23 = vpop.permute.xlu1 %2190 }
 0x3ef   : > { %2194 = vst.msk [vmem:[%s3235_s19] sm:$0x1f] %vm2193_vm6, %v2191_v23 }
 0x3f2   : > { %v2199_v53 = vpop.permute.xlu1 %2198  ;;  %v2210_v9 = vpop.permute.xlu0 %2209 }
 0x3f3   : > { %2202 = vst.msk [vmem:[%s3235_s19] sm:$0x1f] %vm2201_vm7, %v2199_v53 }
 0x3f4   : > { %2212 = vst.msk [vmem:[%s3235_s19 + $0x8] sm:$0x1f] %vm2184_vm5, %v2210_v9 }
 0x3f6   : > { %v2217_v49 = vpop.permute.xlu0 %2216 }
 0x3f7   : > { %2219 = vst.msk [vmem:[%s3235_s19 + $0x8] sm:$0x1f] %vm2193_vm6, %v2217_v49 }
 0x3fa   : > { %v2224_v22 = vpop.permute.xlu0 %2223  ;;  %v2234_v46 = vpop.permute.xlu1 %2233 }
 0x3fb   : > { %2226 = vst.msk [vmem:[%s3235_s19 + $0x8] sm:$0x1f] %vm2201_vm7, %v2224_v22 }
 0x3fc   : > { %2236 = vst.msk [vmem:[%s3235_s19 + $0x10] sm:$0x1f] %vm2184_vm5, %v2234_v46 }
 0x3fe   : > { %v2241_v10 = vpop.permute.xlu1 %2240 }
 0x3ff   : > { %2243 = vst.msk [vmem:[%s3235_s19 + $0x10] sm:$0x1f] %vm2193_vm6, %v2241_v10 }
 0x402   : > { %v2248_v41 = vpop.permute.xlu1 %2247  ;;  %v2258_v21 = vpop.permute.xlu0 %2257 }
 0x403   : > { %2250 = vst.msk [vmem:[%s3235_s19 + $0x10] sm:$0x1f] %vm2201_vm7, %v2248_v41 }
 0x404   : > { %2260 = vst.msk [vmem:[%s3235_s19 + $0x18] sm:$0x1f] %vm2184_vm5, %v2258_v21 }
 0x406   : > { %v2265_v13 = vpop.permute.xlu0 %2264 }
 0x407   : > { %2267 = vst.msk [vmem:[%s3235_s19 + $0x18] sm:$0x1f] %vm2193_vm6, %v2265_v13 }
 0x40a   : > { %v2272_v12 = vpop.permute.xlu0 %2271  ;;  %v2282_v6 = vpop.permute.xlu1 %2281 }
 0x40b   : > { %2274 = vst.msk [vmem:[%s3235_s19 + $0x18] sm:$0x1f] %vm2201_vm7, %v2272_v12 }
 0x40c   : > { %2284 = vst.msk [vmem:[%s3235_s19 + $0x20] sm:$0x1f] %vm2184_vm5, %v2282_v6 }
 0x40e   : > { %v2289_v58 = vpop.permute.xlu1 %2288 }
 0x40f   : > { %2291 = vst.msk [vmem:[%s3235_s19 + $0x20] sm:$0x1f] %vm2193_vm6, %v2289_v58 }
 0x412   : > { %v2296_v1 = vpop.permute.xlu1 %2295  ;;  %v2306_v31 = vpop.permute.xlu0 %2305 }
 0x413   : > { %2298 = vst.msk [vmem:[%s3235_s19 + $0x20] sm:$0x1f] %vm2201_vm7, %v2296_v1 }
 0x414   : > { %2308 = vst.msk [vmem:[%s3235_s19 + $0x28] sm:$0x1f] %vm2184_vm5, %v2306_v31 }
 0x416   : > { %v2313_v20 = vpop.permute.xlu0 %2312 }
 0x417   : > { %2315 = vst.msk [vmem:[%s3235_s19 + $0x28] sm:$0x1f] %vm2193_vm6, %v2313_v20 }
 0x41a   : > { %v2320_v38 = vpop.permute.xlu0 %2319  ;;  %v2330_v19 = vpop.permute.xlu1 %2329 }
 0x41b   : > { %2322 = vst.msk [vmem:[%s3235_s19 + $0x28] sm:$0x1f] %vm2201_vm7, %v2320_v38 }
 0x41c   : > { %2332 = vst.msk [vmem:[%s3235_s19 + $0x30] sm:$0x1f] %vm2184_vm5, %v2330_v19 }
 0x41e   : > { %v2337_v42 = vpop.permute.xlu1 %2336 }
 0x41f   : > { %2339 = vst.msk [vmem:[%s3235_s19 + $0x30] sm:$0x1f] %vm2193_vm6, %v2337_v42 }
 0x422   : > { %v2344_v18 = vpop.permute.xlu1 %2343  ;;  %v2354_v43 = vpop.permute.xlu0 %2353 }
 0x423   : > { %2346 = vst.msk [vmem:[%s3235_s19 + $0x30] sm:$0x1f] %vm2201_vm7, %v2344_v18 }
 0x424   : > { %2356 = vst.msk [vmem:[%s3235_s19 + $0x38] sm:$0x1f] %vm2184_vm5, %v2354_v43 }
 0x426   : > { %v2361_v39 = vpop.permute.xlu0 %2360 }
 0x427   : > { %2363 = vst.msk [vmem:[%s3235_s19 + $0x38] sm:$0x1f] %vm2193_vm6, %v2361_v39 }
 0x42a   : > { %v2366_v17 = vpop.permute.xlu0 %2365 }
 0x42b   : > { %2368 = vst.msk [vmem:[%s3235_s19 + $0x38] sm:$0x1f] %vm2201_vm7, %v2366_v17 }
 0x42c PF: > { %s16_s21 = sadd.s32 1, %s2672_s21  }
 0x42d   : > { %p13_p4 = scmp.ge.s32.totalorder %s16_s21, 4  }
 0x42f   :  { %15 = sbr.rel (!%p13_p4) target bundleno = 1 (0x1), region = 74 }

</bundles_post_ra>
